<compile_context>
chip_gen: v7x
topology: tpu7x:2x2x1
jax: 0.10.0
libtpu: 0.0.40
codegen_flags: <defaults>
</compile_context>

<pallas_src>
import math
import functools

import jax
import jax.numpy as jnp
from jax.experimental import pallas as pl
from jax.experimental.pallas import tpu as pltpu


# ---------------------------------------------------------------------------
# Kernel
# ---------------------------------------------------------------------------

def _attention_layer(h, col_neg, row_keep, wq_ref, bq_ref, wk_ref, bk_ref,
                     wv_ref, bv_ref, *, scale, q_tile, mxu_dtype):
    """One SelfAttentionFCLayer on a (Bt, N, Din) f32 activation slab."""
    Bt, N, Din = h.shape
    Wp = wq_ref.shape[1]

    # QKV projections as single flattened matmuls: (Bt*N, Din) @ (Din, Wp).
    # Weights arrive already in mxu_dtype (bf16) from the wrapper; biases f32.
    hf = h.reshape(Bt * N, Din).astype(mxu_dtype)
    q = jnp.dot(hf, wq_ref[...], preferred_element_type=jnp.float32) + bq_ref[...]
    k = jnp.dot(hf, wk_ref[...], preferred_element_type=jnp.float32) + bk_ref[...]
    v = jnp.dot(hf, wv_ref[...], preferred_element_type=jnp.float32) + bv_ref[...]

    # Fold 1/sqrt(W_orig) into q (cheaper than scaling the (N, N) scores).
    q = (q * jnp.float32(scale)).reshape(Bt, N, Wp).astype(mxu_dtype)
    k = k.reshape(Bt, N, Wp).astype(mxu_dtype)
    v = v.reshape(Bt, N, Wp).astype(mxu_dtype)

    outs = []
    for q0 in range(0, N, q_tile):            # static -> unrolled; 1 iter if q_tile == N
        qi = q[:, q0:q0 + q_tile]              # (Bt, tq, Wp)
        scores = jnp.einsum("bnd,bmd->bnm", qi, k,
                            preferred_element_type=jnp.float32)   # (Bt, tq, N) f32
        # Column masking via a (Bt, 1, N) additive bias: masked cols become
        # ~-1e12, so exp(masked - m) underflows to exactly 0.0 in f32, which is
        # bit-identical to torch's masked_fill(-1e12) -> softmax -> *(1-mask).
        masked = scores + col_neg
        m = jnp.max(masked, axis=-1, keepdims=True)
        e = jnp.exp(masked - m)
        denom = jnp.sum(e, axis=-1, keepdims=True)
        # Row validity (i < valid) folded into the reciprocal: fully-masked
        # rows come out exactly 0 with no extra (Bt, tq, N) multiply.
        scale_row = row_keep[:, q0:q0 + q_tile] * pl.reciprocal(denom, approx=True)
        probs = (e * scale_row).astype(mxu_dtype)
        outs.append(jnp.einsum("bnm,bmd->bnd", probs, v,
                               preferred_element_type=jnp.float32))
    return outs[0] if len(outs) == 1 else jnp.concatenate(outs, axis=1)


def _global_graph_kernel(valid_ref,        # SMEM, (B,) int32 (scalar prefetch)
                         x_ref,            # VMEM, (Bt, N, Din_pad) f32
                         *rest,            # 6 weight/bias refs per layer, then o_ref
                         scale, q_tile, mxu_dtype):
    o_ref = rest[-1]
    w_refs = rest[:-1]
    num_layers = len(w_refs) // 6

    Bt, N, _ = x_ref.shape
    base = pl.program_id(0) * Bt

    # Tiny O(Bt*N) mask data built once and reused by every layer (no
    # (Bt, N, N) f32 keep/neg arrays kept live across layers).
    col_ids = jax.lax.broadcasted_iota(jnp.int32, (1, N), 1)
    row_ids = jax.lax.broadcasted_iota(jnp.int32, (N, 1), 0)
    col_neg_l, row_keep_l = [], []
    for lb in range(Bt):                       # Bt static -> unrolled, O(N) work each
        valid = valid_ref[base + lb]
        col_neg_l.append(jnp.where(col_ids >= valid,
                                   jnp.float32(-1.0e12), jnp.float32(0.0)))
        row_keep_l.append((row_ids < valid).astype(jnp.float32))
    col_neg = jnp.stack(col_neg_l, axis=0)     # (Bt, 1, N) f32 additive bias
    row_keep = jnp.stack(row_keep_l, axis=0)   # (Bt, N, 1) f32 row validity

    # All layers stay resident in VMEM.
    h = x_ref[...]
    for li in range(num_layers):               # static -> unrolled (layer 0 Din differs)
        h = _attention_layer(h, col_neg, row_keep, *w_refs[6 * li: 6 * (li + 1)],
                             scale=scale, q_tile=q_tile, mxu_dtype=mxu_dtype)
    o_ref[...] = h.astype(o_ref.dtype)


# ---------------------------------------------------------------------------
# Generation-aware sizing helpers
# ---------------------------------------------------------------------------

def _round_up(x, m):
    return ((x + m - 1) // m) * m


def _vmem_limit_bytes():
    """Requested VMEM limit: chip capacity minus headroom (never 100%)."""
    cap = 64 * 1024 * 1024                          # safe fallback (v7x-sized)
    try:
        info = pltpu.get_tpu_info()
        cap = int(getattr(info, "vmem_capacity_bytes", cap)) or cap
    except Exception:
        pass
    return max(16 * 1024 * 1024,
               min(int(cap * 0.85), cap - 8 * 1024 * 1024))


def _num_tensorcores():
    try:
        kind = jax.devices()[0].device_kind.lower()
    except Exception:
        return 1
    # Multi-TensorCore chips (megacore / v7x); v5e & v6e are single-TC.
    if "v7" in kind or "v4" in kind or "v5p" in kind:
        return 2
    return 1


def _pick_batch_tile(B, N, din_pad, w_pad, num_layers, vmem_limit, min_steps):
    """Largest divisor of B whose estimated VMEM footprint fits, while keeping
    >= min_steps grid steps when B allows (min_steps > 1 only on multi-TC chips)."""
    def est_bytes(bt):
        x_blk = 2 * bt * N * din_pad * 4            # double-buffered f32 input block
        o_blk = 2 * bt * N * w_pad * 4              # double-buffered f32 output block
        weights = 0
        d = din_pad
        for _ in range(num_layers):
            weights += 3 * (d * w_pad * 2 + w_pad * 4)   # bf16 W + f32 bias, 1 buffer
            d = w_pad
        act = bt * N * (din_pad + 4 * w_pad) * 4    # h + q/k/v + layer output
        tmp = 3 * bt * N * N * 4                    # scores/exp/probs (before q-tiling)
        return x_blk + o_blk + weights + act + tmp

    steps_target = min(B, max(min_steps, 1))
    max_bt = max(1, B // steps_target)
    best = 1
    for d in range(1, B + 1):
        if B % d or d > max_bt:
            continue
        if est_bytes(d) <= int(vmem_limit * 0.7):
            best = d
    return best


def _pick_q_tile(Bt, N, vmem_limit):
    """Query-tile size so the (Bt, tq, N) f32 softmax temporaries fit comfortably."""
    budget = max(vmem_limit // 4, 1)
    divs = sorted([d for d in range(1, N + 1) if N % d == 0], reverse=True)
    fitting = [d for d in divs if 3 * Bt * d * N * 4 <= budget]
    if not fitting:
        return divs[-1]
    for d in fitting:
        if d % 8 == 0:          # keep sublane-aligned slices when possible
            return d
    return fitting[0]


# ---------------------------------------------------------------------------
# Wrapper
# ---------------------------------------------------------------------------

def global_graph_forward(params, x, valid_lens, *, batch_tile=None,
                         mxu_dtype=jnp.bfloat16):
    """GlobalGraph.forward: every SelfAttentionFCLayer fused in one pallas_call.

    x: (B, N, Din) float32; valid_lens: (B,) int.  Returns (B, N, W) float32.
    Note: bf16 MXU operands (f32 accumulation) and pl.reciprocal(approx=True)
    are intentional approximations vs a pure-f32 reference.
    """
    x = x.astype(jnp.float32)
    valid_lens = valid_lens.astype(jnp.int32)
    B, N, Din = x.shape
    W = params[0]["wq"].shape[1]
    num_layers = len(params)
    scale = 1.0 / math.sqrt(W)                  # scale uses the ORIGINAL width

    # Lane-dense padding (multiples of 128) for layer-0 Din and W.  Exact:
    # padded x columns / weight rows / bias entries are zero.
    Din_pad = _round_up(Din, 128)
    W_pad = _round_up(W, 128)
    if Din_pad != Din:
        x = jnp.pad(x, ((0, 0), (0, 0), (0, Din_pad - Din)))

    # Pad + cast weights to bf16 in the wrapper (halves weight DMA / VMEM).
    flat_args = []
    d_in, d_in_pad = Din, Din_pad
    for layer in params:
        for name in ("q", "k", "v"):
            w = jnp.pad(layer[f"w{name}"],
                        ((0, d_in_pad - d_in), (0, W_pad - W))).astype(mxu_dtype)
            b = jnp.pad(layer[f"b{name}"], ((0, 0), (0, W_pad - W)))  # f32 bias
            flat_args += [w, b]
        d_in, d_in_pad = W, W_pad

    vmem_limit = _vmem_limit_bytes()
    n_cores = _num_tensorcores()
    min_steps = 2 * n_cores if n_cores > 1 else 1
    Bt = batch_tile if batch_tile is not None else _pick_batch_tile(
        B, N, Din_pad, W_pad, num_layers, vmem_limit, min_steps)
    assert B % Bt == 0, (B, Bt)
    q_tile = _pick_q_tile(Bt, N, vmem_limit)

    def build_in_specs(single_buffer_weights):
        kw = ({"pipeline_mode": pl.Buffered(1)} if single_buffer_weights else {})
        specs = [pl.BlockSpec((Bt, N, Din_pad), lambda b, vl: (b, 0, 0))]
        d_pad = Din_pad
        for _ in range(num_layers):
            # Grid-invariant (constant index_map): DMA'd once, reused each step.
            wspec = pl.BlockSpec((d_pad, W_pad), lambda b, vl: (0, 0), **kw)
            bspec = pl.BlockSpec((1, W_pad), lambda b, vl: (0, 0), **kw)
            specs += [wspec, bspec, wspec, bspec, wspec, bspec]
            d_pad = W_pad
        return specs

    def run(single_buffer_weights):
        grid_spec = pltpu.PrefetchScalarGridSpec(
            num_scalar_prefetch=1,
            grid=(B // Bt,),
            in_specs=build_in_specs(single_buffer_weights),
            out_specs=pl.BlockSpec((Bt, N, W_pad), lambda b, vl: (b, 0, 0)),
        )
        fn = pl.pallas_call(
            functools.partial(_global_graph_kernel, scale=scale,
                              q_tile=q_tile, mxu_dtype=mxu_dtype),
            out_shape=jax.ShapeDtypeStruct((B, N, W_pad), jnp.float32),
            grid_spec=grid_spec,
            compiler_params=pltpu.CompilerParams(
                dimension_semantics=("parallel",),
                vmem_limit_bytes=vmem_limit,
            ),
        )
        return fn(valid_lens, x, *flat_args)

    try:
        out = run(True)               # single-buffered grid-invariant weights
    except Exception:
        out = run(False)              # fallback: default double-buffering

    return out if W_pad == W else out[..., :W]


# ---------------------------------------------------------------------------
# Init + pure-JAX reference
# ---------------------------------------------------------------------------

def init_global_graph_params(key, input_size, global_graph_width,
                             num_global_layers=1):
    """Deterministic init mirroring nn.Linear (U(-1/sqrt(fan_in), 1/sqrt(fan_in)))."""
    params = []
    d_in = input_size
    for _ in range(num_global_layers):
        layer = {}
        for name in ("q", "k", "v"):
            key, kw, kb = jax.random.split(key, 3)
            bound = 1.0 / math.sqrt(d_in)
            layer[f"w{name}"] = jax.random.uniform(
                kw, (d_in, global_graph_width), jnp.float32, -bound, bound)
            layer[f"b{name}"] = jax.random.uniform(
                kb, (1, global_graph_width), jnp.float32, -bound, bound)
        params.append(layer)
        d_in = global_graph_width
    return params


def _reference_forward(params, x, valid_lens):
    """Pure-JAX f32 reference replicating the PyTorch semantics."""
    for layer in params:
        q = x @ layer["wq"] + layer["bq"][0]
        k = x @ layer["wk"] + layer["bk"][0]
        v = x @ layer["wv"] + layer["bv"][0]
        W = q.shape[-1]
        scores = jnp.einsum("bnd,bmd->bnm", q, k) / math.sqrt(W)
        N = scores.shape[-1]
        idx = jnp.arange(N)
        vl = valid_lens.reshape(-1, 1, 1)
        mask = (idx[None, None, :] >= vl) | (idx[None, :, None] >= vl)
        masked = jnp.where(mask, -1.0e12, scores)
        probs = jax.nn.softmax(masked, axis=-1) * (1.0 - mask.astype(jnp.float32))
        x = jnp.einsum("bnm,bmd->bnd", probs, v)
    return x


if __name__ == "__main__":
    B, N = 2, 8
    input_size, global_graph_width = 16, 32
    num_global_layers = 2          # exercise the fused multi-layer path

    key = jax.random.PRNGKey(0)
    kp, kx = jax.random.split(key)

    params = init_global_graph_params(kp, input_size, global_graph_width,
                                      num_global_layers=num_global_layers)
    x = jax.random.normal(kx, (B, N, input_size), jnp.float32)
    valid_lens = jnp.array([5, 8], dtype=jnp.int32)

    out = global_graph_forward(params, x, valid_lens)
    out = jax.block_until_ready(out)

    ref = _reference_forward(params, x, valid_lens)
    assert out.shape == (B, N, global_graph_width)
    # Tolerance reflects bf16 MXU operands with f32 accumulation (and the
    # approx reciprocal) vs the pure-f32 reference.
    max_err = float(jnp.max(jnp.abs(out - ref)))
    assert jnp.allclose(out, ref, rtol=2e-2, atol=2e-2), max_err

    print("KERNEL_OK")
</pallas_src>

<mosaic_0001>
module attributes {stable_mosaic.version = 11 : i64} {
  func.func @_global_graph_kernel(%arg0: i32, %arg1: memref<2xi32, #tpu.memory_space<smem>>, %arg2: memref<2x8x128xf32, #tpu.memory_space<vmem>>, %arg3: memref<128x128xbf16, #tpu.memory_space<vmem>>, %arg4: memref<1x128xf32, #tpu.memory_space<vmem>>, %arg5: memref<128x128xbf16, #tpu.memory_space<vmem>>, %arg6: memref<1x128xf32, #tpu.memory_space<vmem>>, %arg7: memref<128x128xbf16, #tpu.memory_space<vmem>>, %arg8: memref<1x128xf32, #tpu.memory_space<vmem>>, %arg9: memref<128x128xbf16, #tpu.memory_space<vmem>>, %arg10: memref<1x128xf32, #tpu.memory_space<vmem>>, %arg11: memref<128x128xbf16, #tpu.memory_space<vmem>>, %arg12: memref<1x128xf32, #tpu.memory_space<vmem>>, %arg13: memref<128x128xbf16, #tpu.memory_space<vmem>>, %arg14: memref<1x128xf32, #tpu.memory_space<vmem>>, %arg15: memref<2x8x128xf32, #tpu.memory_space<vmem>>) attributes {dimension_semantics = [#tpu.dimension_semantics<parallel>], iteration_bounds = array<i64: 1>, scalar_prefetch = 1 : i64, scratch_operands = 0 : i64, tpu.core_type = #tpu.core_type<tc>, window_params = [{transform_indices = @transform_0, window_bounds = array<i64: 2, 8, 128>}, {pipeline_mode = #tpu.pipeline_mode<synchronous>, transform_indices = @transform_1, window_bounds = array<i64: 128, 128>}, {pipeline_mode = #tpu.pipeline_mode<synchronous>, transform_indices = @transform_2, window_bounds = array<i64: 1, 128>}, {pipeline_mode = #tpu.pipeline_mode<synchronous>, transform_indices = @transform_3, window_bounds = array<i64: 128, 128>}, {pipeline_mode = #tpu.pipeline_mode<synchronous>, transform_indices = @transform_4, window_bounds = array<i64: 1, 128>}, {pipeline_mode = #tpu.pipeline_mode<synchronous>, transform_indices = @transform_5, window_bounds = array<i64: 128, 128>}, {pipeline_mode = #tpu.pipeline_mode<synchronous>, transform_indices = @transform_6, window_bounds = array<i64: 1, 128>}, {pipeline_mode = #tpu.pipeline_mode<synchronous>, transform_indices = @transform_7, window_bounds = array<i64: 128, 128>}, {pipeline_mode = #tpu.pipeline_mode<synchronous>, transform_indices = @transform_8, window_bounds = array<i64: 1, 128>}, {pipeline_mode = #tpu.pipeline_mode<synchronous>, transform_indices = @transform_9, window_bounds = array<i64: 128, 128>}, {pipeline_mode = #tpu.pipeline_mode<synchronous>, transform_indices = @transform_10, window_bounds = array<i64: 1, 128>}, {pipeline_mode = #tpu.pipeline_mode<synchronous>, transform_indices = @transform_11, window_bounds = array<i64: 128, 128>}, {pipeline_mode = #tpu.pipeline_mode<synchronous>, transform_indices = @transform_12, window_bounds = array<i64: 1, 128>}, {transform_indices = @transform_13, window_bounds = array<i64: 2, 8, 128>}]} {
    %c2_i32 = arith.constant 2 : i32
    %0 = arith.muli %arg0, %c2_i32 : i32
    %1 = tpu.iota {dimensions = array<i32: 1>} : vector<1x8xi32>
    %2 = tpu.iota {dimensions = array<i32: 0>} : vector<8x1xi32>
    %c0_i32 = arith.constant 0 : i32
    %3 = arith.addi %0, %c0_i32 : i32
    %4 = arith.index_cast %3 : i32 to index
    %5 = memref.load %arg1[%4] : memref<2xi32, #tpu.memory_space<smem>>
    %6 = vector.broadcast %5 : i32 to vector<1x8xi32>
    %7 = arith.cmpi sge, %1, %6 : vector<1x8xi32>
    %cst = arith.constant -9.99999995E+11 : f32
    %cst_0 = arith.constant 0.000000e+00 : f32
    %8 = vector.broadcast %cst : f32 to vector<1x8xf32>
    %9 = vector.broadcast %cst_0 : f32 to vector<1x8xf32>
    %10 = arith.select %7, %8, %9 : vector<1x8xi1>, vector<1x8xf32>
    %11 = vector.broadcast %5 : i32 to vector<8x1xi32>
    %12 = arith.cmpi slt, %2, %11 : vector<8x1xi32>
    %13 = arith.extui %12 : vector<8x1xi1> to vector<8x1xi32>
    %14 = arith.sitofp %13 : vector<8x1xi32> to vector<8x1xf32>
    %c1_i32 = arith.constant 1 : i32
    %15 = arith.addi %0, %c1_i32 : i32
    %16 = arith.index_cast %15 : i32 to index
    %17 = memref.load %arg1[%16] : memref<2xi32, #tpu.memory_space<smem>>
    %18 = vector.broadcast %17 : i32 to vector<1x8xi32>
    %19 = arith.cmpi sge, %1, %18 : vector<1x8xi32>
    %cst_1 = arith.constant -9.99999995E+11 : f32
    %cst_2 = arith.constant 0.000000e+00 : f32
    %20 = vector.broadcast %cst_1 : f32 to vector<1x8xf32>
    %21 = vector.broadcast %cst_2 : f32 to vector<1x8xf32>
    %22 = arith.select %19, %20, %21 : vector<1x8xi1>, vector<1x8xf32>
    %23 = vector.broadcast %17 : i32 to vector<8x1xi32>
    %24 = arith.cmpi slt, %2, %23 : vector<8x1xi32>
    %25 = arith.extui %24 : vector<8x1xi1> to vector<8x1xi32>
    %26 = arith.sitofp %25 : vector<8x1xi32> to vector<8x1xf32>
    %27 = vector.shape_cast %10 : vector<1x8xf32> to vector<1x1x8xf32>
    %28 = vector.shape_cast %22 : vector<1x8xf32> to vector<1x1x8xf32>
    %29 = tpu.concatenate %27, %28 in 0 : vector<1x1x8xf32>, vector<1x1x8xf32> -> vector<2x1x8xf32>
    %30 = vector.shape_cast %14 : vector<8x1xf32> to vector<1x8x1xf32>
    %31 = vector.shape_cast %26 : vector<8x1xf32> to vector<1x8x1xf32>
    %32 = tpu.concatenate %30, %31 in 0 : vector<1x8x1xf32>, vector<1x8x1xf32> -> vector<2x8x1xf32>
    %c0 = arith.constant 0 : index
    %c0_3 = arith.constant 0 : index
    %c0_4 = arith.constant 0 : index
    %33 = vector.load %arg2[%c0, %c0_3, %c0_4] : memref<2x8x128xf32, #tpu.memory_space<vmem>>, vector<2x8x128xf32>
    %34 = vector.shape_cast %33 : vector<2x8x128xf32> to vector<16x128xf32>
    %35 = arith.truncf %34 : vector<16x128xf32> to vector<16x128xbf16>
    %c0_5 = arith.constant 0 : index
    %c0_6 = arith.constant 0 : index
    %36 = vector.load %arg3[%c0_5, %c0_6] : memref<128x128xbf16, #tpu.memory_space<vmem>>, vector<128x128xbf16>
    %cst_7 = arith.constant dense<0.000000e+00> : vector<16x128xf32>
    %37 = tpu.matmul %35, %36, %cst_7 {dimension_numbers = #tpu.dot_dimension_numbers<[1], [0], [0], [1], [0, 0, 1, 1], [], []>} : vector<16x128xbf16>, vector<128x128xbf16>, vector<16x128xf32> -> vector<16x128xf32>
    %c0_8 = arith.constant 0 : index
    %c0_9 = arith.constant 0 : index
    %38 = vector.load %arg4[%c0_8, %c0_9] : memref<1x128xf32, #tpu.memory_space<vmem>>, vector<1x128xf32>
    %39 = vector.broadcast %38 : vector<1x128xf32> to vector<16x128xf32>
    %40 = arith.addf %37, %39 : vector<16x128xf32>
    %c0_10 = arith.constant 0 : index
    %c0_11 = arith.constant 0 : index
    %41 = vector.load %arg5[%c0_10, %c0_11] : memref<128x128xbf16, #tpu.memory_space<vmem>>, vector<128x128xbf16>
    %cst_12 = arith.constant dense<0.000000e+00> : vector<16x128xf32>
    %42 = tpu.matmul %35, %41, %cst_12 {dimension_numbers = #tpu.dot_dimension_numbers<[1], [0], [0], [1], [0, 0, 1, 1], [], []>} : vector<16x128xbf16>, vector<128x128xbf16>, vector<16x128xf32> -> vector<16x128xf32>
    %c0_13 = arith.constant 0 : index
    %c0_14 = arith.constant 0 : index
    %43 = vector.load %arg6[%c0_13, %c0_14] : memref<1x128xf32, #tpu.memory_space<vmem>>, vector<1x128xf32>
    %44 = vector.broadcast %43 : vector<1x128xf32> to vector<16x128xf32>
    %45 = arith.addf %42, %44 : vector<16x128xf32>
    %c0_15 = arith.constant 0 : index
    %c0_16 = arith.constant 0 : index
    %46 = vector.load %arg7[%c0_15, %c0_16] : memref<128x128xbf16, #tpu.memory_space<vmem>>, vector<128x128xbf16>
    %cst_17 = arith.constant dense<0.000000e+00> : vector<16x128xf32>
    %47 = tpu.matmul %35, %46, %cst_17 {dimension_numbers = #tpu.dot_dimension_numbers<[1], [0], [0], [1], [0, 0, 1, 1], [], []>} : vector<16x128xbf16>, vector<128x128xbf16>, vector<16x128xf32> -> vector<16x128xf32>
    %c0_18 = arith.constant 0 : index
    %c0_19 = arith.constant 0 : index
    %48 = vector.load %arg8[%c0_18, %c0_19] : memref<1x128xf32, #tpu.memory_space<vmem>>, vector<1x128xf32>
    %49 = vector.broadcast %48 : vector<1x128xf32> to vector<16x128xf32>
    %50 = arith.addf %47, %49 : vector<16x128xf32>
    %cst_20 = arith.constant 0.176776692 : f32
    %51 = vector.broadcast %cst_20 : f32 to vector<16x128xf32>
    %52 = arith.mulf %40, %51 : vector<16x128xf32>
    %53 = vector.shape_cast %52 : vector<16x128xf32> to vector<2x8x128xf32>
    %54 = arith.truncf %53 : vector<2x8x128xf32> to vector<2x8x128xbf16>
    %55 = vector.shape_cast %45 : vector<16x128xf32> to vector<2x8x128xf32>
    %56 = arith.truncf %55 : vector<2x8x128xf32> to vector<2x8x128xbf16>
    %57 = vector.shape_cast %50 : vector<16x128xf32> to vector<2x8x128xf32>
    %58 = arith.truncf %57 : vector<2x8x128xf32> to vector<2x8x128xbf16>
    "tpu.trace_start"() <{level = 10 : i32, message = "bnd,bmd->bnm"}> : () -> ()
    %cst_21 = arith.constant dense<0.000000e+00> : vector<2x8x8xf32>
    %59 = tpu.matmul %54, %56, %cst_21 {dimension_numbers = #tpu.dot_dimension_numbers<[2], [2], [1], [1], [0, 0, 0, 1, 1, 1], [0], [0]>} : vector<2x8x128xbf16>, vector<2x8x128xbf16>, vector<2x8x8xf32> -> vector<2x8x8xf32>
    "tpu.trace_stop"() : () -> ()
    %60 = vector.broadcast %29 : vector<2x1x8xf32> to vector<2x8x8xf32>
    %61 = arith.addf %59, %60 : vector<2x8x8xf32>
    %cst_22 = arith.constant dense<0xFF800000> : vector<2x8xf32>
    %62 = vector.multi_reduction <maximumf>, %61, %cst_22 [2] : vector<2x8x8xf32> to vector<2x8xf32>
    %63 = vector.shape_cast %62 : vector<2x8xf32> to vector<2x8x1xf32>
    %64 = vector.broadcast %63 : vector<2x8x1xf32> to vector<2x8x8xf32>
    %65 = arith.subf %61, %64 : vector<2x8x8xf32>
    %66 = math.exp %65 : vector<2x8x8xf32>
    %cst_23 = arith.constant dense<0.000000e+00> : vector<2x8xf32>
    %67 = vector.multi_reduction <add>, %66, %cst_23 [2] : vector<2x8x8xf32> to vector<2x8xf32>
    %68 = vector.shape_cast %67 : vector<2x8xf32> to vector<2x8x1xf32>
    %69 = tpu.reciprocal %68 {approx = true} : vector<2x8x1xf32> -> vector<2x8x1xf32>
    %70 = arith.mulf %32, %69 : vector<2x8x1xf32>
    %71 = vector.broadcast %70 : vector<2x8x1xf32> to vector<2x8x8xf32>
    %72 = arith.mulf %66, %71 : vector<2x8x8xf32>
    %73 = arith.truncf %72 : vector<2x8x8xf32> to vector<2x8x8xbf16>
    "tpu.trace_start"() <{level = 10 : i32, message = "bnm,bmd->bnd"}> : () -> ()
    %cst_24 = arith.constant dense<0.000000e+00> : vector<2x8x128xf32>
    %74 = tpu.matmul %73, %58, %cst_24 {dimension_numbers = #tpu.dot_dimension_numbers<[2], [1], [1], [2], [0, 0, 0, 1, 1, 2], [0], [0]>} : vector<2x8x8xbf16>, vector<2x8x128xbf16>, vector<2x8x128xf32> -> vector<2x8x128xf32>
    "tpu.trace_stop"() : () -> ()
    %75 = vector.shape_cast %74 : vector<2x8x128xf32> to vector<16x128xf32>
    %76 = arith.truncf %75 : vector<16x128xf32> to vector<16x128xbf16>
    %c0_25 = arith.constant 0 : index
    %c0_26 = arith.constant 0 : index
    %77 = vector.load %arg9[%c0_25, %c0_26] : memref<128x128xbf16, #tpu.memory_space<vmem>>, vector<128x128xbf16>
    %cst_27 = arith.constant dense<0.000000e+00> : vector<16x128xf32>
    %78 = tpu.matmul %76, %77, %cst_27 {dimension_numbers = #tpu.dot_dimension_numbers<[1], [0], [0], [1], [0, 0, 1, 1], [], []>} : vector<16x128xbf16>, vector<128x128xbf16>, vector<16x128xf32> -> vector<16x128xf32>
    %c0_28 = arith.constant 0 : index
    %c0_29 = arith.constant 0 : index
    %79 = vector.load %arg10[%c0_28, %c0_29] : memref<1x128xf32, #tpu.memory_space<vmem>>, vector<1x128xf32>
    %80 = vector.broadcast %79 : vector<1x128xf32> to vector<16x128xf32>
    %81 = arith.addf %78, %80 : vector<16x128xf32>
    %c0_30 = arith.constant 0 : index
    %c0_31 = arith.constant 0 : index
    %82 = vector.load %arg11[%c0_30, %c0_31] : memref<128x128xbf16, #tpu.memory_space<vmem>>, vector<128x128xbf16>
    %cst_32 = arith.constant dense<0.000000e+00> : vector<16x128xf32>
    %83 = tpu.matmul %76, %82, %cst_32 {dimension_numbers = #tpu.dot_dimension_numbers<[1], [0], [0], [1], [0, 0, 1, 1], [], []>} : vector<16x128xbf16>, vector<128x128xbf16>, vector<16x128xf32> -> vector<16x128xf32>
    %c0_33 = arith.constant 0 : index
    %c0_34 = arith.constant 0 : index
    %84 = vector.load %arg12[%c0_33, %c0_34] : memref<1x128xf32, #tpu.memory_space<vmem>>, vector<1x128xf32>
    %85 = vector.broadcast %84 : vector<1x128xf32> to vector<16x128xf32>
    %86 = arith.addf %83, %85 : vector<16x128xf32>
    %c0_35 = arith.constant 0 : index
    %c0_36 = arith.constant 0 : index
    %87 = vector.load %arg13[%c0_35, %c0_36] : memref<128x128xbf16, #tpu.memory_space<vmem>>, vector<128x128xbf16>
    %cst_37 = arith.constant dense<0.000000e+00> : vector<16x128xf32>
    %88 = tpu.matmul %76, %87, %cst_37 {dimension_numbers = #tpu.dot_dimension_numbers<[1], [0], [0], [1], [0, 0, 1, 1], [], []>} : vector<16x128xbf16>, vector<128x128xbf16>, vector<16x128xf32> -> vector<16x128xf32>
    %c0_38 = arith.constant 0 : index
    %c0_39 = arith.constant 0 : index
    %89 = vector.load %arg14[%c0_38, %c0_39] : memref<1x128xf32, #tpu.memory_space<vmem>>, vector<1x128xf32>
    %90 = vector.broadcast %89 : vector<1x128xf32> to vector<16x128xf32>
    %91 = arith.addf %88, %90 : vector<16x128xf32>
    %cst_40 = arith.constant 0.176776692 : f32
    %92 = vector.broadcast %cst_40 : f32 to vector<16x128xf32>
    %93 = arith.mulf %81, %92 : vector<16x128xf32>
    %94 = vector.shape_cast %93 : vector<16x128xf32> to vector<2x8x128xf32>
    %95 = arith.truncf %94 : vector<2x8x128xf32> to vector<2x8x128xbf16>
    %96 = vector.shape_cast %86 : vector<16x128xf32> to vector<2x8x128xf32>
    %97 = arith.truncf %96 : vector<2x8x128xf32> to vector<2x8x128xbf16>
    %98 = vector.shape_cast %91 : vector<16x128xf32> to vector<2x8x128xf32>
    %99 = arith.truncf %98 : vector<2x8x128xf32> to vector<2x8x128xbf16>
    "tpu.trace_start"() <{level = 10 : i32, message = "bnd,bmd->bnm"}> : () -> ()
    %cst_41 = arith.constant dense<0.000000e+00> : vector<2x8x8xf32>
    %100 = tpu.matmul %95, %97, %cst_41 {dimension_numbers = #tpu.dot_dimension_numbers<[2], [2], [1], [1], [0, 0, 0, 1, 1, 1], [0], [0]>} : vector<2x8x128xbf16>, vector<2x8x128xbf16>, vector<2x8x8xf32> -> vector<2x8x8xf32>
    "tpu.trace_stop"() : () -> ()
    %101 = vector.broadcast %29 : vector<2x1x8xf32> to vector<2x8x8xf32>
    %102 = arith.addf %100, %101 : vector<2x8x8xf32>
    %cst_42 = arith.constant dense<0xFF800000> : vector<2x8xf32>
    %103 = vector.multi_reduction <maximumf>, %102, %cst_42 [2] : vector<2x8x8xf32> to vector<2x8xf32>
    %104 = vector.shape_cast %103 : vector<2x8xf32> to vector<2x8x1xf32>
    %105 = vector.broadcast %104 : vector<2x8x1xf32> to vector<2x8x8xf32>
    %106 = arith.subf %102, %105 : vector<2x8x8xf32>
    %107 = math.exp %106 : vector<2x8x8xf32>
    %cst_43 = arith.constant dense<0.000000e+00> : vector<2x8xf32>
    %108 = vector.multi_reduction <add>, %107, %cst_43 [2] : vector<2x8x8xf32> to vector<2x8xf32>
    %109 = vector.shape_cast %108 : vector<2x8xf32> to vector<2x8x1xf32>
    %110 = tpu.reciprocal %109 {approx = true} : vector<2x8x1xf32> -> vector<2x8x1xf32>
    %111 = arith.mulf %32, %110 : vector<2x8x1xf32>
    %112 = vector.broadcast %111 : vector<2x8x1xf32> to vector<2x8x8xf32>
    %113 = arith.mulf %107, %112 : vector<2x8x8xf32>
    %114 = arith.truncf %113 : vector<2x8x8xf32> to vector<2x8x8xbf16>
    "tpu.trace_start"() <{level = 10 : i32, message = "bnm,bmd->bnd"}> : () -> ()
    %cst_44 = arith.constant dense<0.000000e+00> : vector<2x8x128xf32>
    %115 = tpu.matmul %114, %99, %cst_44 {dimension_numbers = #tpu.dot_dimension_numbers<[2], [1], [1], [2], [0, 0, 0, 1, 1, 2], [0], [0]>} : vector<2x8x8xbf16>, vector<2x8x128xbf16>, vector<2x8x128xf32> -> vector<2x8x128xf32>
    "tpu.trace_stop"() : () -> ()
    %c0_45 = arith.constant 0 : index
    %c0_46 = arith.constant 0 : index
    %c0_47 = arith.constant 0 : index
    %116 = vector.load %arg15[%c0_45, %c0_46, %c0_47] : memref<2x8x128xf32, #tpu.memory_space<vmem>>, vector<2x8x128xf32>
    tpu.vector_store %arg15[%c0_45, %c0_46, %c0_47], %115 {strides = array<i32>} : memref<2x8x128xf32, #tpu.memory_space<vmem>>, vector<2x8x128xf32>,
    return
  }
  func.func @transform_0(%arg0: i32, %arg1: memref<2xi32, #tpu.memory_space<smem>>) -> (i32, i32, i32) {
    %c0_i32 = arith.constant 0 : i32
    %c0_i32_0 = arith.constant 0 : i32
    %c0_i32_1 = arith.constant 0 : i32
    return %arg0, %c0_i32, %c0_i32_0 : i32, i32, i32
  }
  func.func @transform_1(%arg0: i32, %arg1: memref<2xi32, #tpu.memory_space<smem>>) -> (i32, i32) {
    %c0_i32 = arith.constant 0 : i32
    %c0_i32_0 = arith.constant 0 : i32
    %c0_i32_1 = arith.constant 0 : i32
    return %c0_i32, %c0_i32_0 : i32, i32
  }
  func.func @transform_2(%arg0: i32, %arg1: memref<2xi32, #tpu.memory_space<smem>>) -> (i32, i32) {
    %c0_i32 = arith.constant 0 : i32
    %c0_i32_0 = arith.constant 0 : i32
    %c0_i32_1 = arith.constant 0 : i32
    return %c0_i32, %c0_i32_0 : i32, i32
  }
  func.func @transform_3(%arg0: i32, %arg1: memref<2xi32, #tpu.memory_space<smem>>) -> (i32, i32) {
    %c0_i32 = arith.constant 0 : i32
    %c0_i32_0 = arith.constant 0 : i32
    %c0_i32_1 = arith.constant 0 : i32
    return %c0_i32, %c0_i32_0 : i32, i32
  }
  func.func @transform_4(%arg0: i32, %arg1: memref<2xi32, #tpu.memory_space<smem>>) -> (i32, i32) {
    %c0_i32 = arith.constant 0 : i32
    %c0_i32_0 = arith.constant 0 : i32
    %c0_i32_1 = arith.constant 0 : i32
    return %c0_i32, %c0_i32_0 : i32, i32
  }
  func.func @transform_5(%arg0: i32, %arg1: memref<2xi32, #tpu.memory_space<smem>>) -> (i32, i32) {
    %c0_i32 = arith.constant 0 : i32
    %c0_i32_0 = arith.constant 0 : i32
    %c0_i32_1 = arith.constant 0 : i32
    return %c0_i32, %c0_i32_0 : i32, i32
  }
  func.func @transform_6(%arg0: i32, %arg1: memref<2xi32, #tpu.memory_space<smem>>) -> (i32, i32) {
    %c0_i32 = arith.constant 0 : i32
    %c0_i32_0 = arith.constant 0 : i32
    %c0_i32_1 = arith.constant 0 : i32
    return %c0_i32, %c0_i32_0 : i32, i32
  }
  func.func @transform_7(%arg0: i32, %arg1: memref<2xi32, #tpu.memory_space<smem>>) -> (i32, i32) {
    %c0_i32 = arith.constant 0 : i32
    %c0_i32_0 = arith.constant 0 : i32
    %c0_i32_1 = arith.constant 0 : i32
    return %c0_i32, %c0_i32_0 : i32, i32
  }
  func.func @transform_8(%arg0: i32, %arg1: memref<2xi32, #tpu.memory_space<smem>>) -> (i32, i32) {
    %c0_i32 = arith.constant 0 : i32
    %c0_i32_0 = arith.constant 0 : i32
    %c0_i32_1 = arith.constant 0 : i32
    return %c0_i32, %c0_i32_0 : i32, i32
  }
  func.func @transform_9(%arg0: i32, %arg1: memref<2xi32, #tpu.memory_space<smem>>) -> (i32, i32) {
    %c0_i32 = arith.constant 0 : i32
    %c0_i32_0 = arith.constant 0 : i32
    %c0_i32_1 = arith.constant 0 : i32
    return %c0_i32, %c0_i32_0 : i32, i32
  }
  func.func @transform_10(%arg0: i32, %arg1: memref<2xi32, #tpu.memory_space<smem>>) -> (i32, i32) {
    %c0_i32 = arith.constant 0 : i32
    %c0_i32_0 = arith.constant 0 : i32
    %c0_i32_1 = arith.constant 0 : i32
    return %c0_i32, %c0_i32_0 : i32, i32
  }
  func.func @transform_11(%arg0: i32, %arg1: memref<2xi32, #tpu.memory_space<smem>>) -> (i32, i32) {
    %c0_i32 = arith.constant 0 : i32
    %c0_i32_0 = arith.constant 0 : i32
    %c0_i32_1 = arith.constant 0 : i32
    return %c0_i32, %c0_i32_0 : i32, i32
  }
  func.func @transform_12(%arg0: i32, %arg1: memref<2xi32, #tpu.memory_space<smem>>) -> (i32, i32) {
    %c0_i32 = arith.constant 0 : i32
    %c0_i32_0 = arith.constant 0 : i32
    %c0_i32_1 = arith.constant 0 : i32
    return %c0_i32, %c0_i32_0 : i32, i32
  }
  func.func @transform_13(%arg0: i32, %arg1: memref<2xi32, #tpu.memory_space<smem>>) -> (i32, i32, i32) {
    %c0_i32 = arith.constant 0 : i32
    %c0_i32_0 = arith.constant 0 : i32
    %c0_i32_1 = arith.constant 0 : i32
    return %arg0, %c0_i32, %c0_i32_0 : i32, i32, i32
  }
}

module attributes {stable_mosaic.version = 11 : i64} {
  func.func @_global_graph_kernel(%arg0: i32, %arg1: memref<2xi32, #tpu.memory_space<smem>>, %arg2: memref<2x8x128xf32, #tpu.memory_space<vmem>>, %arg3: memref<128x128xbf16, #tpu.memory_space<vmem>>, %arg4: memref<1x128xf32, #tpu.memory_space<vmem>>, %arg5: memref<128x128xbf16, #tpu.memory_space<vmem>>, %arg6: memref<1x128xf32, #tpu.memory_space<vmem>>, %arg7: memref<128x128xbf16, #tpu.memory_space<vmem>>, %arg8: memref<1x128xf32, #tpu.memory_space<vmem>>, %arg9: memref<128x128xbf16, #tpu.memory_space<vmem>>, %arg10: memref<1x128xf32, #tpu.memory_space<vmem>>, %arg11: memref<128x128xbf16, #tpu.memory_space<vmem>>, %arg12: memref<1x128xf32, #tpu.memory_space<vmem>>, %arg13: memref<128x128xbf16, #tpu.memory_space<vmem>>, %arg14: memref<1x128xf32, #tpu.memory_space<vmem>>, %arg15: memref<2x8x128xf32, #tpu.memory_space<vmem>>) attributes {dimension_semantics = [#tpu.dimension_semantics<parallel>], iteration_bounds = array<i64: 1>, scalar_prefetch = 1 : i64, scratch_operands = 0 : i64, tpu.core_type = #tpu.core_type<tc>, window_params = [{transform_indices = @transform_0, window_bounds = array<i64: 2, 8, 128>}, {pipeline_mode = #tpu.pipeline_mode<synchronous>, transform_indices = @transform_1, window_bounds = array<i64: 128, 128>}, {pipeline_mode = #tpu.pipeline_mode<synchronous>, transform_indices = @transform_2, window_bounds = array<i64: 1, 128>}, {pipeline_mode = #tpu.pipeline_mode<synchronous>, transform_indices = @transform_3, window_bounds = array<i64: 128, 128>}, {pipeline_mode = #tpu.pipeline_mode<synchronous>, transform_indices = @transform_4, window_bounds = array<i64: 1, 128>}, {pipeline_mode = #tpu.pipeline_mode<synchronous>, transform_indices = @transform_5, window_bounds = array<i64: 128, 128>}, {pipeline_mode = #tpu.pipeline_mode<synchronous>, transform_indices = @transform_6, window_bounds = array<i64: 1, 128>}, {pipeline_mode = #tpu.pipeline_mode<synchronous>, transform_indices = @transform_7, window_bounds = array<i64: 128, 128>}, {pipeline_mode = #tpu.pipeline_mode<synchronous>, transform_indices = @transform_8, window_bounds = array<i64: 1, 128>}, {pipeline_mode = #tpu.pipeline_mode<synchronous>, transform_indices = @transform_9, window_bounds = array<i64: 128, 128>}, {pipeline_mode = #tpu.pipeline_mode<synchronous>, transform_indices = @transform_10, window_bounds = array<i64: 1, 128>}, {pipeline_mode = #tpu.pipeline_mode<synchronous>, transform_indices = @transform_11, window_bounds = array<i64: 128, 128>}, {pipeline_mode = #tpu.pipeline_mode<synchronous>, transform_indices = @transform_12, window_bounds = array<i64: 1, 128>}, {transform_indices = @transform_13, window_bounds = array<i64: 2, 8, 128>}]} {
    %c2_i32 = arith.constant 2 : i32
    %0 = arith.muli %arg0, %c2_i32 : i32
    %1 = tpu.iota {dimensions = array<i32: 1>} : vector<1x8xi32>
    %2 = tpu.iota {dimensions = array<i32: 0>} : vector<8x1xi32>
    %c0_i32 = arith.constant 0 : i32
    %3 = arith.addi %0, %c0_i32 : i32
    %4 = arith.index_cast %3 : i32 to index
    %5 = memref.load %arg1[%4] : memref<2xi32, #tpu.memory_space<smem>>
    %6 = vector.broadcast %5 : i32 to vector<1x8xi32>
    %7 = arith.cmpi sge, %1, %6 : vector<1x8xi32>
    %cst = arith.constant -9.99999995E+11 : f32
    %cst_0 = arith.constant 0.000000e+00 : f32
    %8 = vector.broadcast %cst : f32 to vector<1x8xf32>
    %9 = vector.broadcast %cst_0 : f32 to vector<1x8xf32>
    %10 = arith.select %7, %8, %9 : vector<1x8xi1>, vector<1x8xf32>
    %11 = vector.broadcast %5 : i32 to vector<8x1xi32>
    %12 = arith.cmpi slt, %2, %11 : vector<8x1xi32>
    %13 = arith.extui %12 : vector<8x1xi1> to vector<8x1xi32>
    %14 = arith.sitofp %13 : vector<8x1xi32> to vector<8x1xf32>
    %c1_i32 = arith.constant 1 : i32
    %15 = arith.addi %0, %c1_i32 : i32
    %16 = arith.index_cast %15 : i32 to index
    %17 = memref.load %arg1[%16] : memref<2xi32, #tpu.memory_space<smem>>
    %18 = vector.broadcast %17 : i32 to vector<1x8xi32>
    %19 = arith.cmpi sge, %1, %18 : vector<1x8xi32>
    %cst_1 = arith.constant -9.99999995E+11 : f32
    %cst_2 = arith.constant 0.000000e+00 : f32
    %20 = vector.broadcast %cst_1 : f32 to vector<1x8xf32>
    %21 = vector.broadcast %cst_2 : f32 to vector<1x8xf32>
    %22 = arith.select %19, %20, %21 : vector<1x8xi1>, vector<1x8xf32>
    %23 = vector.broadcast %17 : i32 to vector<8x1xi32>
    %24 = arith.cmpi slt, %2, %23 : vector<8x1xi32>
    %25 = arith.extui %24 : vector<8x1xi1> to vector<8x1xi32>
    %26 = arith.sitofp %25 : vector<8x1xi32> to vector<8x1xf32>
    %27 = vector.shape_cast %10 : vector<1x8xf32> to vector<1x1x8xf32>
    %28 = vector.shape_cast %22 : vector<1x8xf32> to vector<1x1x8xf32>
    %29 = tpu.concatenate %27, %28 in 0 : vector<1x1x8xf32>, vector<1x1x8xf32> -> vector<2x1x8xf32>
    %30 = vector.shape_cast %14 : vector<8x1xf32> to vector<1x8x1xf32>
    %31 = vector.shape_cast %26 : vector<8x1xf32> to vector<1x8x1xf32>
    %32 = tpu.concatenate %30, %31 in 0 : vector<1x8x1xf32>, vector<1x8x1xf32> -> vector<2x8x1xf32>
    %c0 = arith.constant 0 : index
    %c0_3 = arith.constant 0 : index
    %c0_4 = arith.constant 0 : index
    %33 = vector.load %arg2[%c0, %c0_3, %c0_4] : memref<2x8x128xf32, #tpu.memory_space<vmem>>, vector<2x8x128xf32>
    %34 = vector.shape_cast %33 : vector<2x8x128xf32> to vector<16x128xf32>
    %35 = arith.truncf %34 : vector<16x128xf32> to vector<16x128xbf16>
    %c0_5 = arith.constant 0 : index
    %c0_6 = arith.constant 0 : index
    %36 = vector.load %arg3[%c0_5, %c0_6] : memref<128x128xbf16, #tpu.memory_space<vmem>>, vector<128x128xbf16>
    %cst_7 = arith.constant dense<0.000000e+00> : vector<16x128xf32>
    %37 = tpu.matmul %35, %36, %cst_7 {dimension_numbers = #tpu.dot_dimension_numbers<[1], [0], [0], [1], [0, 0, 1, 1], [], []>} : vector<16x128xbf16>, vector<128x128xbf16>, vector<16x128xf32> -> vector<16x128xf32>
    %c0_8 = arith.constant 0 : index
    %c0_9 = arith.constant 0 : index
    %38 = vector.load %arg4[%c0_8, %c0_9] : memref<1x128xf32, #tpu.memory_space<vmem>>, vector<1x128xf32>
    %39 = vector.broadcast %38 : vector<1x128xf32> to vector<16x128xf32>
    %40 = arith.addf %37, %39 : vector<16x128xf32>
    %c0_10 = arith.constant 0 : index
    %c0_11 = arith.constant 0 : index
    %41 = vector.load %arg5[%c0_10, %c0_11] : memref<128x128xbf16, #tpu.memory_space<vmem>>, vector<128x128xbf16>
    %cst_12 = arith.constant dense<0.000000e+00> : vector<16x128xf32>
    %42 = tpu.matmul %35, %41, %cst_12 {dimension_numbers = #tpu.dot_dimension_numbers<[1], [0], [0], [1], [0, 0, 1, 1], [], []>} : vector<16x128xbf16>, vector<128x128xbf16>, vector<16x128xf32> -> vector<16x128xf32>
    %c0_13 = arith.constant 0 : index
    %c0_14 = arith.constant 0 : index
    %43 = vector.load %arg6[%c0_13, %c0_14] : memref<1x128xf32, #tpu.memory_space<vmem>>, vector<1x128xf32>
    %44 = vector.broadcast %43 : vector<1x128xf32> to vector<16x128xf32>
    %45 = arith.addf %42, %44 : vector<16x128xf32>
    %c0_15 = arith.constant 0 : index
    %c0_16 = arith.constant 0 : index
    %46 = vector.load %arg7[%c0_15, %c0_16] : memref<128x128xbf16, #tpu.memory_space<vmem>>, vector<128x128xbf16>
    %cst_17 = arith.constant dense<0.000000e+00> : vector<16x128xf32>
    %47 = tpu.matmul %35, %46, %cst_17 {dimension_numbers = #tpu.dot_dimension_numbers<[1], [0], [0], [1], [0, 0, 1, 1], [], []>} : vector<16x128xbf16>, vector<128x128xbf16>, vector<16x128xf32> -> vector<16x128xf32>
    %c0_18 = arith.constant 0 : index
    %c0_19 = arith.constant 0 : index
    %48 = vector.load %arg8[%c0_18, %c0_19] : memref<1x128xf32, #tpu.memory_space<vmem>>, vector<1x128xf32>
    %49 = vector.broadcast %48 : vector<1x128xf32> to vector<16x128xf32>
    %50 = arith.addf %47, %49 : vector<16x128xf32>
    %cst_20 = arith.constant 0.176776692 : f32
    %51 = vector.broadcast %cst_20 : f32 to vector<16x128xf32>
    %52 = arith.mulf %40, %51 : vector<16x128xf32>
    %53 = vector.shape_cast %52 : vector<16x128xf32> to vector<2x8x128xf32>
    %54 = arith.truncf %53 : vector<2x8x128xf32> to vector<2x8x128xbf16>
    %55 = vector.shape_cast %45 : vector<16x128xf32> to vector<2x8x128xf32>
    %56 = arith.truncf %55 : vector<2x8x128xf32> to vector<2x8x128xbf16>
    %57 = vector.shape_cast %50 : vector<16x128xf32> to vector<2x8x128xf32>
    %58 = arith.truncf %57 : vector<2x8x128xf32> to vector<2x8x128xbf16>
    "tpu.trace_start"() <{level = 10 : i32, message = "bnd,bmd->bnm"}> : () -> ()
    %cst_21 = arith.constant dense<0.000000e+00> : vector<2x8x8xf32>
    %59 = tpu.matmul %54, %56, %cst_21 {dimension_numbers = #tpu.dot_dimension_numbers<[2], [2], [1], [1], [0, 0, 0, 1, 1, 1], [0], [0]>} : vector<2x8x128xbf16>, vector<2x8x128xbf16>, vector<2x8x8xf32> -> vector<2x8x8xf32>
    "tpu.trace_stop"() : () -> ()
    %60 = vector.broadcast %29 : vector<2x1x8xf32> to vector<2x8x8xf32>
    %61 = arith.addf %59, %60 : vector<2x8x8xf32>
    %cst_22 = arith.constant dense<0xFF800000> : vector<2x8xf32>
    %62 = vector.multi_reduction <maximumf>, %61, %cst_22 [2] : vector<2x8x8xf32> to vector<2x8xf32>
    %63 = vector.shape_cast %62 : vector<2x8xf32> to vector<2x8x1xf32>
    %64 = vector.broadcast %63 : vector<2x8x1xf32> to vector<2x8x8xf32>
    %65 = arith.subf %61, %64 : vector<2x8x8xf32>
    %66 = math.exp %65 : vector<2x8x8xf32>
    %cst_23 = arith.constant dense<0.000000e+00> : vector<2x8xf32>
    %67 = vector.multi_reduction <add>, %66, %cst_23 [2] : vector<2x8x8xf32> to vector<2x8xf32>
    %68 = vector.shape_cast %67 : vector<2x8xf32> to vector<2x8x1xf32>
    %69 = tpu.reciprocal %68 {approx = true} : vector<2x8x1xf32> -> vector<2x8x1xf32>
    %70 = arith.mulf %32, %69 : vector<2x8x1xf32>
    %71 = vector.broadcast %70 : vector<2x8x1xf32> to vector<2x8x8xf32>
    %72 = arith.mulf %66, %71 : vector<2x8x8xf32>
    %73 = arith.truncf %72 : vector<2x8x8xf32> to vector<2x8x8xbf16>
    "tpu.trace_start"() <{level = 10 : i32, message = "bnm,bmd->bnd"}> : () -> ()
    %cst_24 = arith.constant dense<0.000000e+00> : vector<2x8x128xf32>
    %74 = tpu.matmul %73, %58, %cst_24 {dimension_numbers = #tpu.dot_dimension_numbers<[2], [1], [1], [2], [0, 0, 0, 1, 1, 2], [0], [0]>} : vector<2x8x8xbf16>, vector<2x8x128xbf16>, vector<2x8x128xf32> -> vector<2x8x128xf32>
    "tpu.trace_stop"() : () -> ()
    %75 = vector.shape_cast %74 : vector<2x8x128xf32> to vector<16x128xf32>
    %76 = arith.truncf %75 : vector<16x128xf32> to vector<16x128xbf16>
    %c0_25 = arith.constant 0 : index
    %c0_26 = arith.constant 0 : index
    %77 = vector.load %arg9[%c0_25, %c0_26] : memref<128x128xbf16, #tpu.memory_space<vmem>>, vector<128x128xbf16>
    %cst_27 = arith.constant dense<0.000000e+00> : vector<16x128xf32>
    %78 = tpu.matmul %76, %77, %cst_27 {dimension_numbers = #tpu.dot_dimension_numbers<[1], [0], [0], [1], [0, 0, 1, 1], [], []>} : vector<16x128xbf16>, vector<128x128xbf16>, vector<16x128xf32> -> vector<16x128xf32>
    %c0_28 = arith.constant 0 : index
    %c0_29 = arith.constant 0 : index
    %79 = vector.load %arg10[%c0_28, %c0_29] : memref<1x128xf32, #tpu.memory_space<vmem>>, vector<1x128xf32>
    %80 = vector.broadcast %79 : vector<1x128xf32> to vector<16x128xf32>
    %81 = arith.addf %78, %80 : vector<16x128xf32>
    %c0_30 = arith.constant 0 : index
    %c0_31 = arith.constant 0 : index
    %82 = vector.load %arg11[%c0_30, %c0_31] : memref<128x128xbf16, #tpu.memory_space<vmem>>, vector<128x128xbf16>
    %cst_32 = arith.constant dense<0.000000e+00> : vector<16x128xf32>
    %83 = tpu.matmul %76, %82, %cst_32 {dimension_numbers = #tpu.dot_dimension_numbers<[1], [0], [0], [1], [0, 0, 1, 1], [], []>} : vector<16x128xbf16>, vector<128x128xbf16>, vector<16x128xf32> -> vector<16x128xf32>
    %c0_33 = arith.constant 0 : index
    %c0_34 = arith.constant 0 : index
    %84 = vector.load %arg12[%c0_33, %c0_34] : memref<1x128xf32, #tpu.memory_space<vmem>>, vector<1x128xf32>
    %85 = vector.broadcast %84 : vector<1x128xf32> to vector<16x128xf32>
    %86 = arith.addf %83, %85 : vector<16x128xf32>
    %c0_35 = arith.constant 0 : index
    %c0_36 = arith.constant 0 : index
    %87 = vector.load %arg13[%c0_35, %c0_36] : memref<128x128xbf16, #tpu.memory_space<vmem>>, vector<128x128xbf16>
    %cst_37 = arith.constant dense<0.000000e+00> : vector<16x128xf32>
    %88 = tpu.matmul %76, %87, %cst_37 {dimension_numbers = #tpu.dot_dimension_numbers<[1], [0], [0], [1], [0, 0, 1, 1], [], []>} : vector<16x128xbf16>, vector<128x128xbf16>, vector<16x128xf32> -> vector<16x128xf32>
    %c0_38 = arith.constant 0 : index
    %c0_39 = arith.constant 0 : index
    %89 = vector.load %arg14[%c0_38, %c0_39] : memref<1x128xf32, #tpu.memory_space<vmem>>, vector<1x128xf32>
    %90 = vector.broadcast %89 : vector<1x128xf32> to vector<16x128xf32>
    %91 = arith.addf %88, %90 : vector<16x128xf32>
    %cst_40 = arith.constant 0.176776692 : f32
    %92 = vector.broadcast %cst_40 : f32 to vector<16x128xf32>
    %93 = arith.mulf %81, %92 : vector<16x128xf32>
    %94 = vector.shape_cast %93 : vector<16x128xf32> to vector<2x8x128xf32>
    %95 = arith.truncf %94 : vector<2x8x128xf32> to vector<2x8x128xbf16>
    %96 = vector.shape_cast %86 : vector<16x128xf32> to vector<2x8x128xf32>
    %97 = arith.truncf %96 : vector<2x8x128xf32> to vector<2x8x128xbf16>
    %98 = vector.shape_cast %91 : vector<16x128xf32> to vector<2x8x128xf32>
    %99 = arith.truncf %98 : vector<2x8x128xf32> to vector<2x8x128xbf16>
    "tpu.trace_start"() <{level = 10 : i32, message = "bnd,bmd->bnm"}> : () -> ()
    %cst_41 = arith.constant dense<0.000000e+00> : vector<2x8x8xf32>
    %100 = tpu.matmul %95, %97, %cst_41 {dimension_numbers = #tpu.dot_dimension_numbers<[2], [2], [1], [1], [0, 0, 0, 1, 1, 1], [0], [0]>} : vector<2x8x128xbf16>, vector<2x8x128xbf16>, vector<2x8x8xf32> -> vector<2x8x8xf32>
    "tpu.trace_stop"() : () -> ()
    %101 = vector.broadcast %29 : vector<2x1x8xf32> to vector<2x8x8xf32>
    %102 = arith.addf %100, %101 : vector<2x8x8xf32>
    %cst_42 = arith.constant dense<0xFF800000> : vector<2x8xf32>
    %103 = vector.multi_reduction <maximumf>, %102, %cst_42 [2] : vector<2x8x8xf32> to vector<2x8xf32>
    %104 = vector.shape_cast %103 : vector<2x8xf32> to vector<2x8x1xf32>
    %105 = vector.broadcast %104 : vector<2x8x1xf32> to vector<2x8x8xf32>
    %106 = arith.subf %102, %105 : vector<2x8x8xf32>
    %107 = math.exp %106 : vector<2x8x8xf32>
    %cst_43 = arith.constant dense<0.000000e+00> : vector<2x8xf32>
    %108 = vector.multi_reduction <add>, %107, %cst_43 [2] : vector<2x8x8xf32> to vector<2x8xf32>
    %109 = vector.shape_cast %108 : vector<2x8xf32> to vector<2x8x1xf32>
    %110 = tpu.reciprocal %109 {approx = true} : vector<2x8x1xf32> -> vector<2x8x1xf32>
    %111 = arith.mulf %32, %110 : vector<2x8x1xf32>
    %112 = vector.broadcast %111 : vector<2x8x1xf32> to vector<2x8x8xf32>
    %113 = arith.mulf %107, %112 : vector<2x8x8xf32>
    %114 = arith.truncf %113 : vector<2x8x8xf32> to vector<2x8x8xbf16>
    "tpu.trace_start"() <{level = 10 : i32, message = "bnm,bmd->bnd"}> : () -> ()
    %cst_44 = arith.constant dense<0.000000e+00> : vector<2x8x128xf32>
    %115 = tpu.matmul %114, %99, %cst_44 {dimension_numbers = #tpu.dot_dimension_numbers<[2], [1], [1], [2], [0, 0, 0, 1, 1, 2], [0], [0]>} : vector<2x8x8xbf16>, vector<2x8x128xbf16>, vector<2x8x128xf32> -> vector<2x8x128xf32>
    "tpu.trace_stop"() : () -> ()
    %c0_45 = arith.constant 0 : index
    %c0_46 = arith.constant 0 : index
    %c0_47 = arith.constant 0 : index
    %116 = vector.load %arg15[%c0_45, %c0_46, %c0_47] : memref<2x8x128xf32, #tpu.memory_space<vmem>>, vector<2x8x128xf32>
    tpu.vector_store %arg15[%c0_45, %c0_46, %c0_47], %115 {strides = array<i32>} : memref<2x8x128xf32, #tpu.memory_space<vmem>>, vector<2x8x128xf32>,
    return
  }
  func.func @transform_0(%arg0: i32, %arg1: memref<2xi32, #tpu.memory_space<smem>>) -> (i32, i32, i32) {
    %c0_i32 = arith.constant 0 : i32
    %c0_i32_0 = arith.constant 0 : i32
    %c0_i32_1 = arith.constant 0 : i32
    return %arg0, %c0_i32, %c0_i32_0 : i32, i32, i32
  }
  func.func @transform_1(%arg0: i32, %arg1: memref<2xi32, #tpu.memory_space<smem>>) -> (i32, i32) {
    %c0_i32 = arith.constant 0 : i32
    %c0_i32_0 = arith.constant 0 : i32
    %c0_i32_1 = arith.constant 0 : i32
    return %c0_i32, %c0_i32_0 : i32, i32
  }
  func.func @transform_2(%arg0: i32, %arg1: memref<2xi32, #tpu.memory_space<smem>>) -> (i32, i32) {
    %c0_i32 = arith.constant 0 : i32
    %c0_i32_0 = arith.constant 0 : i32
    %c0_i32_1 = arith.constant 0 : i32
    return %c0_i32, %c0_i32_0 : i32, i32
  }
  func.func @transform_3(%arg0: i32, %arg1: memref<2xi32, #tpu.memory_space<smem>>) -> (i32, i32) {
    %c0_i32 = arith.constant 0 : i32
    %c0_i32_0 = arith.constant 0 : i32
    %c0_i32_1 = arith.constant 0 : i32
    return %c0_i32, %c0_i32_0 : i32, i32
  }
  func.func @transform_4(%arg0: i32, %arg1: memref<2xi32, #tpu.memory_space<smem>>) -> (i32, i32) {
    %c0_i32 = arith.constant 0 : i32
    %c0_i32_0 = arith.constant 0 : i32
    %c0_i32_1 = arith.constant 0 : i32
    return %c0_i32, %c0_i32_0 : i32, i32
  }
  func.func @transform_5(%arg0: i32, %arg1: memref<2xi32, #tpu.memory_space<smem>>) -> (i32, i32) {
    %c0_i32 = arith.constant 0 : i32
    %c0_i32_0 = arith.constant 0 : i32
    %c0_i32_1 = arith.constant 0 : i32
    return %c0_i32, %c0_i32_0 : i32, i32
  }
  func.func @transform_6(%arg0: i32, %arg1: memref<2xi32, #tpu.memory_space<smem>>) -> (i32, i32) {
    %c0_i32 = arith.constant 0 : i32
    %c0_i32_0 = arith.constant 0 : i32
    %c0_i32_1 = arith.constant 0 : i32
    return %c0_i32, %c0_i32_0 : i32, i32
  }
  func.func @transform_7(%arg0: i32, %arg1: memref<2xi32, #tpu.memory_space<smem>>) -> (i32, i32) {
    %c0_i32 = arith.constant 0 : i32
    %c0_i32_0 = arith.constant 0 : i32
    %c0_i32_1 = arith.constant 0 : i32
    return %c0_i32, %c0_i32_0 : i32, i32
  }
  func.func @transform_8(%arg0: i32, %arg1: memref<2xi32, #tpu.memory_space<smem>>) -> (i32, i32) {
    %c0_i32 = arith.constant 0 : i32
    %c0_i32_0 = arith.constant 0 : i32
    %c0_i32_1 = arith.constant 0 : i32
    return %c0_i32, %c0_i32_0 : i32, i32
  }
  func.func @transform_9(%arg0: i32, %arg1: memref<2xi32, #tpu.memory_space<smem>>) -> (i32, i32) {
    %c0_i32 = arith.constant 0 : i32
    %c0_i32_0 = arith.constant 0 : i32
    %c0_i32_1 = arith.constant 0 : i32
    return %c0_i32, %c0_i32_0 : i32, i32
  }
  func.func @transform_10(%arg0: i32, %arg1: memref<2xi32, #tpu.memory_space<smem>>) -> (i32, i32) {
    %c0_i32 = arith.constant 0 : i32
    %c0_i32_0 = arith.constant 0 : i32
    %c0_i32_1 = arith.constant 0 : i32
    return %c0_i32, %c0_i32_0 : i32, i32
  }
  func.func @transform_11(%arg0: i32, %arg1: memref<2xi32, #tpu.memory_space<smem>>) -> (i32, i32) {
    %c0_i32 = arith.constant 0 : i32
    %c0_i32_0 = arith.constant 0 : i32
    %c0_i32_1 = arith.constant 0 : i32
    return %c0_i32, %c0_i32_0 : i32, i32
  }
  func.func @transform_12(%arg0: i32, %arg1: memref<2xi32, #tpu.memory_space<smem>>) -> (i32, i32) {
    %c0_i32 = arith.constant 0 : i32
    %c0_i32_0 = arith.constant 0 : i32
    %c0_i32_1 = arith.constant 0 : i32
    return %c0_i32, %c0_i32_0 : i32, i32
  }
  func.func @transform_13(%arg0: i32, %arg1: memref<2xi32, #tpu.memory_space<smem>>) -> (i32, i32, i32) {
    %c0_i32 = arith.constant 0 : i32
    %c0_i32_0 = arith.constant 0 : i32
    %c0_i32_1 = arith.constant 0 : i32
    return %arg0, %c0_i32, %c0_i32_0 : i32, i32, i32
  }
}

</mosaic_0001>

<bundles_post_ra>
// kernel: tpu_custom_call.1
= control target key start
LH: loop header
LB: loop body
LE: loop exit
PB: predicated region body
PF: predicated region fallthrough
CT: control target
= control target key end

     0   :  { %s2277_s0 = inlined_call_operand.hbm [shape: s32[2], index: 0, kind: input, shape index: {}]   ;;  %s2278_s1 = inlined_call_operand.hbm [shape: f32[2,8,128], index: 1, kind: input, shape index: {}]   ;;  %s2279_s2 = inlined_call_operand.hbm [shape: bf16[128,128], index: 2, kind: input, shape index: {}]   ;;  %s2280_s3 = inlined_call_operand.vmem [shape: f32[1,128], index: 3, kind: input, shape index: {}]   ;;  %s2281_s4 = inlined_call_operand.hbm [shape: bf16[128,128], index: 4, kind: input, shape index: {}]   ;;  %s2282_s5 = inlined_call_operand.vmem [shape: f32[1,128], index: 5, kind: input, shape index: {}]   ;;  %s2283_s6 = inlined_call_operand.hbm [shape: bf16[128,128], index: 6, kind: input, shape index: {}]   ;;  %s2284_s7 = inlined_call_operand.vmem [shape: f32[1,128], index: 7, kind: input, shape index: {}]   ;;  %s2285_s8 = inlined_call_operand.hbm [shape: bf16[128,128], index: 8, kind: input, shape index: {}]   ;;  %s2286_s9 = inlined_call_operand.vmem [shape: f32[1,128], index: 9, kind: input, shape index: {}]   ;;  %s2287_s10 = inlined_call_operand.hbm [shape: bf16[128,128], index: 10, kind: input, shape index: {}]   ;;  %s2288_s11 = inlined_call_operand.vmem [shape: f32[1,128], index: 11, kind: input, shape index: {}]   ;;  %s2289_s12 = inlined_call_operand.hbm [shape: bf16[128,128], index: 12, kind: input, shape index: {}]   ;;  %s2290_s13 = inlined_call_operand.vmem [shape: f32[1,128], index: 13, kind: input, shape index: {}]   ;;  %s2291_s14 = inlined_call_operand.hbm [shape: f32[2,8,128], index: 14, kind: output, shape index: {}]  }
   0x1   :  { %s1687_s15 = scalar_lea.hbm %s2277_s0, 16 }
   0x2   :  { %p1688_p0 = scmp.ne.s32.totalorder %s2277_s0, %s1687_s15  ;;  %p1691_p1 = scmp.lt.u32.totalorder %s1687_s15, %s2277_s0 }
   0x4   :  { %p1693_p2 = pnand %p1691_p1, %p1688_p0 }
   0x6   :  { %1696 = shalt.err (!%p1693_p2)  }
   0x7   :  { %s1885_s20 = smov [#allocation3]  }
   0x8   :  { %20 = dma.hbm_to_smem %s2277_s0, 16, %s1885_s20, [#allocation2] }
   0x9   :  { %1873 = dma.done.wait [#allocation2], 16 }
   0xa   :  { %1874 = vsyncadd [#allocation2], 4294967280 }
   0xb   :  { %22 = sfence }
   0xc   :  { %23 = vsyncpa [#allocation5], 0 }
   0xd   :  { %24 = vsyncpa [#allocation8], 0 }
   0xe   :  { %25 = vsyncpa [#allocation11], 0 }
   0xf   :  { %26 = vsyncpa [#allocation14], 0 }
  0x10   :  { %27 = vsyncpa [#allocation6], 0  ;;  %s1886_s23 = smov [#allocation7]   ;;  %s1697_s27 = scalar_lea.hbm %s2279_s2, 1024 }
  0x11   :  { %s45_s24 = sshll.u32 %s1886_s23, 4  ;;  %p1698_p3 = scmp.ne.s32.totalorder %s2279_s2, %s1697_s27  ;;  %s46_s24 = int_to_ptr.vmem [resolvable:$true] %s45_s24 }
  0x12   :  { %p1701_p4 = scmp.lt.u32.totalorder %s1697_s27, %s2279_s2 }
  0x14   :  { %p1703_p5 = pnand %p1701_p4, %p1698_p3 }
  0x16   :  { %1706 = shalt.err (!%p1703_p5)
}
  0x17   :  { %s1707_s15 = scalar_lea.vmem %s46_s24, 1024  ;;  %p1712_p7 = scmp.lt.s32.totalorder %s46_s24, %s46_s24 }
  0x18   :  { %p1708_p6 = scmp.ne.s32.totalorder %s46_s24, %s1707_s15  ;;  %p1713_p8 = scmp.lt.s32.totalorder %s1707_s15, %s1707_s15 }
  0x1a   :  { %p1714_p9 = por %p1713_p8, %p1712_p7 }
  0x1c   :  { %p1715_p10 = pnand %p1714_p9, %p1708_p6 }
  0x1e   :  { %1718 = shalt.err (!%p1715_p10)
}
  0x1f   :  { %s1887_s16 = smov 64   ;;  %s1888_s17 = smov 4  }
  0x20   :  { %51 = dma.hbm_to_vmem [thread:$0]  %s2279_s2, 1024, %s46_s24, [#allocation8], %s1887_s16, %s1887_s16, %s1888_s17  }
  0x21   :  { %s1889_s20 = smov [#allocation10]   ;;  %s1890_s22 = smov [#allocation13]  }
  0x22   :  { %s73_s21 = sshll.u32 %s1889_s20, 4  ;;  %s101_s23 = sshll.u32 %s1890_s22, 4  ;;  %s74_s21 = int_to_ptr.vmem [resolvable:$true] %s73_s21  ;;  %s102_s23 = int_to_ptr.vmem [resolvable:$true] %s101_s23 }
  0x23   :  { %s1719_s27 = scalar_lea.hbm %s2283_s6, 1024 }
  0x24   :  { %p1720_p11 = scmp.ne.s32.totalorder %s2283_s6, %s1719_s27  ;;  %p1723_p12 = scmp.lt.u32.totalorder %s1719_s27, %s2283_s6 }
  0x26   :  { %p1725_p13 = pnand %p1723_p12, %p1720_p11 }
  0x28   :  { %1728 = shalt.err (!%p1725_p13)
}
  0x29   :  { %s1729_s2 = scalar_lea.vmem %s74_s21, 1024  ;;  %p1734_p1 = scmp.lt.s32.totalorder %s74_s21, %s74_s21 }
  0x2a   :  { %p1730_p0 = scmp.ne.s32.totalorder %s74_s21, %s1729_s2  ;;  %p1735_p2 = scmp.lt.s32.totalorder %s1729_s2, %s1729_s2 }
  0x2c   :  { %p1736_p3 = por %p1735_p2, %p1734_p1 }
  0x2e   :  { %p1737_p4 = pnand %p1736_p3, %p1730_p0 }
  0x30   :  { %1740 = shalt.err (!%p1737_p4)
}
  0x31   :  { %79 = dma.hbm_to_vmem [thread:$0]  %s2283_s6, 1024, %s74_s21, [#allocation11], %s1887_s16, %s1887_s16, %s1888_s17  }
  0x32   :  { %s1741_s20 = scalar_lea.hbm %s2287_s10, 1024 }
  0x33   :  { %p1742_p5 = scmp.ne.s32.totalorder %s2287_s10, %s1741_s20  ;;  %p1745_p6 = scmp.lt.u32.totalorder %s1741_s20, %s2287_s10 }
  0x35   :  { %p1747_p7 = pnand %p1745_p6, %p1742_p5 }
  0x37   :  { %1750 = shalt.err (!%p1747_p7)
}
  0x38   :  { %s1751_s28 = scalar_lea.vmem %s102_s23, 1024  ;;  %p1756_p9 = scmp.lt.s32.totalorder %s102_s23, %s102_s23 }
  0x39   :  { %p1752_p8 = scmp.ne.s32.totalorder %s102_s23, %s1751_s28  ;;  %p1757_p10 = scmp.lt.s32.totalorder %s1751_s28, %s1751_s28 }
  0x3b   :  { %p1758_p11 = por %p1757_p10, %p1756_p9 }
  0x3d   :  { %p1759_p12 = pnand %p1758_p11, %p1752_p8 }
  0x3f   :  { %1762 = shalt.err (!%p1759_p12)
}
  0x40   :  { %107 = dma.hbm_to_vmem [thread:$0]  %s2287_s10, 1024, %s102_s23, [#allocation14], %s1887_s16, %s1887_s16, %s1888_s17  }
  0x41   :  { %s1891_s29 = smov [#allocation4]   ;;  %s1763_s24 = scalar_lea.hbm %s2278_s1, 256 }
  0x42   :  { %s33_s0 = sshll.u32 %s1891_s29, 4  ;;  %p1764_p13 = scmp.ne.s32.totalorder %s2278_s1, %s1763_s24  ;;  %s34_s0 = int_to_ptr.vmem [resolvable:$true] %s33_s0 }
  0x43   :  { %p1767_p0 = scmp.lt.u32.totalorder %s1763_s24, %s2278_s1 }
  0x45   :  { %p1769_p1 = pnand %p1767_p0, %p1764_p13 }
  0x47   :  { %1772 = shalt.err (!%p1769_p1)
}
  0x48   :  { %s1773_s22 = scalar_lea.vmem %s34_s0, 256  ;;  %p1778_p3 = scmp.lt.s32.totalorder %s34_s0, %s34_s0 }
  0x49   :  { %p1774_p2 = scmp.ne.s32.totalorder %s34_s0, %s1773_s22  ;;  %p1779_p4 = scmp.lt.s32.totalorder %s1773_s22, %s1773_s22 }
  0x4b   :  { %p1780_p5 = por %p1779_p4, %p1778_p3 }
  0x4d   :  { %p1781_p6 = pnand %p1780_p5, %p1774_p2 }
  0x4f   :  { %1784 = shalt.err (!%p1781_p6)
}
  0x50   :  { %s1892_s10 = smov 128   ;;  %s1893_s23 = smov 8  }
  0x51   :  { %39 = dma.hbm_to_vmem [thread:$0]  %s2278_s1, 256, %s34_s0, [#allocation5], %s1892_s10, %s1892_s10, %s1893_s23  }
  0x52   :  { %s1894_s27 = smov [#allocation9]   ;;  %s1895_s6 = smov [#allocation12]  }
  0x53   :  { %s59_s28 = sshll.u32 %s1894_s27, 4  ;;  %s87_s21 = sshll.u32 %s1895_s6, 4  ;;  %s60_s28 = int_to_ptr.vmem [resolvable:$true] %s59_s28  ;;  %s2048_s21 = int_to_ptr.vmem [resolvable:$true] %s87_s21 }
  0x54   :  { %s1785_s2 = scalar_lea.hbm %s2281_s4, 1024 }
  0x55   :  { %p1786_p7 = scmp.ne.s32.totalorder %s2281_s4, %s1785_s2  ;;  %p1789_p8 = scmp.lt.u32.totalorder %s1785_s2, %s2281_s4 }
  0x57   :  { %p1791_p9 = pnand %p1789_p8, %p1786_p7 }
  0x59   :  { %1794 = shalt.err (!%p1791_p9)
}
  0x5a   :  { %s1795_s1 = scalar_lea.vmem %s60_s28, 1024  ;;  %p1800_p11 = scmp.lt.s32.totalorder %s60_s28, %s60_s28 }
  0x5b   :  { %p1796_p10 = scmp.ne.s32.totalorder %s60_s28, %s1795_s1  ;;  %p1801_p12 = scmp.lt.s32.totalorder %s1795_s1, %s1795_s1 }
  0x5d   :  { %p1802_p13 = por %p1801_p12, %p1800_p11 }
  0x5f   :  { %p1803_p0 = pnand %p1802_p13, %p1796_p10 }
  0x61   :  { %1806 = shalt.err (!%p1803_p0)
}
  0x62   :  { %65 = dma.hbm_to_vmem [thread:$0]  %s2281_s4, 1024, %s60_s28, [#allocation8], %s1887_s16, %s1887_s16, %s1888_s17  }
  0x63   :  { %s1807_s26 = scalar_lea.hbm %s2285_s8, 1024 }
  0x64   :  { %p1808_p1 = scmp.ne.s32.totalorder %s2285_s8, %s1807_s26  ;;  %p1811_p2 = scmp.lt.u32.totalorder %s1807_s26, %s2285_s8 }
  0x66   :  { %p1813_p3 = pnand %p1811_p2, %p1808_p1 }
  0x68   :  { %1816 = shalt.err (!%p1813_p3)
}
  0x69   :  { %s1817_s2 = scalar_lea.vmem %s2048_s21, 1024  ;;  %p1822_p5 = scmp.lt.s32.totalorder %s2048_s21, %s2048_s21 }
  0x6a   :  { %p1818_p4 = scmp.ne.s32.totalorder %s2048_s21, %s1817_s2  ;;  %p1823_p6 = scmp.lt.s32.totalorder %s1817_s2, %s1817_s2 }
  0x6c   :  { %p1824_p7 = por %p1823_p6, %p1822_p5 }
  0x6e   :  { %p1825_p8 = pnand %p1824_p7, %p1818_p4 }
  0x70   :  { %1828 = shalt.err (!%p1825_p8)
}
  0x71   :  { %93 = dma.hbm_to_vmem [thread:$0]  %s2285_s8, 1024, %s2048_s21, [#allocation11], %s1887_s16, %s1887_s16, %s1888_s17  }
  0x72   :  { %s1896_s24 = smov [#allocation15]   ;;  %s1829_s1 = scalar_lea.hbm %s2289_s12, 1024 }
  0x73   :  { %s115_s15 = sshll.u32 %s1896_s24, 4  ;;  %p1830_p9 = scmp.ne.s32.totalorder %s2289_s12, %s1829_s1  ;;  %s116_s15 = int_to_ptr.vmem [resolvable:$true] %s115_s15 }
  0x74   :  { %p1833_p10 = scmp.lt.u32.totalorder %s1829_s1, %s2289_s12 }
  0x76   :  { %p1835_p11 = pnand %p1833_p10, %p1830_p9 }
  0x78   :  { %1838 = shalt.err (!%p1835_p11)
}
  0x79   :  { %s1839_s26 = scalar_lea.vmem %s116_s15, 1024  ;;  %p1844_p13 = scmp.lt.s32.totalorder %s116_s15, %s116_s15 }
  0x7a   :  { %p1840_p12 = scmp.ne.s32.totalorder %s116_s15, %s1839_s26  ;;  %p1845_p0 = scmp.lt.s32.totalorder %s1839_s26, %s1839_s26 }
  0x7c   :  { %p1846_p1 = por %p1845_p0, %p1844_p13 }
  0x7e   :  { %p1847_p2 = pnand %p1846_p1, %p1840_p12 }
  0x80   :  { %1850 = shalt.err (!%p1847_p2)
}
  0x81   :  { %121 = dma.hbm_to_vmem [thread:$0]  %s2289_s12, 1024, %s116_s15, [#allocation14], %s1887_s16, %s1887_s16, %s1888_s17  }
  0x82   :  { %1875 = dma.done.wait [#allocation5], 256  }
  0x83   :  { %1876 = vsyncadd [#allocation5], 4294967040 }
  0x84   :  { %1877 = dma.done.wait [#allocation8], 2048  }
  0x85   :  { %1878 = vsyncadd [#allocation8], 4294965248 }
  0x86   :  { %1879 = dma.done.wait [#allocation11], 2048  }
  0x87   :  { %1880 = vsyncadd [#allocation11], 4294965248 }
  0x88   :  { %1881 = dma.done.wait [#allocation14], 2048  }
  0x89   :  { %1882 = vsyncadd [#allocation14], 4294965248  ;;  %v1897_v0 = vmov 0.0   ;;  %vm1898_vm0 = vmmov 0   ;;  %v1623_v1 = vld [vmem:[#allocation9] sm:$0xff]   ;;  %v1625_v3 = vld [vmem:[#allocation9 + $0x8] sm:$0xff]   ;;  %v147_v40 = vlaneseq }
  0x8a   :  { %1457 = vmatprep.subr.bf16.mxu1 %v1897_v0  ;;  %1437 = vmatprep.subr.bf16.mxu0 %v1897_v0  ;;  %v1624_v2 = vld [vmem:[#allocation7] sm:$0xff]   ;;  %v1626_v4 = vld [vmem:[#allocation7 + $0x8] sm:$0xff]   ;;  %v1627_v5 = vld [vmem:[#allocation9 + $0x10] sm:$0xff]   ;;  %vm601_vm3 = vcmask 64512   ;;  %vm641_vm4 = vcmask 1043456  }
  0x8b   :  { %1473 = vmatprep.mubr.msk.bf16.mxu1 %vm1898_vm0, %v1897_v0  ;;  %1453 = vmatprep.mubr.msk.bf16.mxu0 %vm1898_vm0, %v1897_v0  ;;  %v1628_v6 = vld [vmem:[#allocation7 + $0x10] sm:$0xff]   ;;  %v1629_v7 = vld [vmem:[#allocation9 + $0x18] sm:$0xff]   ;;  %v1631_v9 = vld [vmem:[#allocation9 + $0x20] sm:$0xff]   ;;  %v148_v41 = vand.u32 127, %v147_v40  ;;  %v2147_v43 = vshrl.u32 %v147_v40, 7 }
  0x8c   :  { %1458 = vmatpush3.bf16.msra.mxu1 %v1623_v1  ;;  %1438 = vmatpush3.bf16.msra.mxu0 %v1624_v2  ;;  %v1630_v8 = vld [vmem:[#allocation7 + $0x18] sm:$0xff]   ;;  %v1632_v10 = vld [vmem:[#allocation7 + $0x20] sm:$0xff]   ;;  %v1633_v11 = vld [vmem:[#allocation9 + $0x28] sm:$0xff]  }
  0x8d   :  { %1459 = vmatprep.subr.bf16.mxu1 %v1897_v0  ;;  %1439 = vmatprep.subr.bf16.mxu0 %v1897_v0  ;;  %v1634_v12 = vld [vmem:[#allocation7 + $0x28] sm:$0xff]   ;;  %v1635_v13 = vld [vmem:[#allocation9 + $0x30] sm:$0xff]   ;;  %v1637_v15 = vld [vmem:[#allocation9 + $0x38] sm:$0xff]   ;;  %v515_v44 = vsub.s32 0, %v2147_v43 }
  0x8e   :  { %v1636_v14 = vld [vmem:[#allocation7 + $0x30] sm:$0xff]   ;;  %v167_v17 = vld [vmem:[#allocation4 + $0x8] sm:$0xff]  ;;  %v1639_v62 = vld [vmem:[#allocation10] sm:$0xff]  }
  0x8f   :  { %v166_v16 = vld [vmem:[#allocation4] sm:$0xff]  ;;  %v1638_v18 = vld [vmem:[#allocation7 + $0x38] sm:$0xff]   ;;  %v1640_v63 = vld [vmem:[#allocation10 + $0x8] sm:$0xff]  }
  0x90   :  { %1460 = vmatpush3.bf16.msra.mxu1 %v1625_v3  ;;  %1440 = vmatpush3.bf16.msra.mxu0 %v1626_v4  ;;  %v2120_v19 = vpack.c.bf16 %v167_v17, %v166_v16  ;;  %v1318_v20 = vld [vmem:[%s2282_s5] ss:$0 sm:$0xff]  ;;  %s2145_s5 = sld [smem:[#allocation3 + $0x1]]  ;;  %v1642_v2 = vld [vmem:[#allocation10 + $0x18] sm:$0xff]   ;;  %v1643_v3 = vld [vmem:[#allocation10 + $0x20] sm:$0xff]   ;;  %v1899_v17 = vmov 0  }
  0x91   :  { %1461 = vmatprep.subr.bf16.mxu1 %v1897_v0  ;;  %1441 = vmatprep.subr.bf16.mxu0 %v1897_v0  ;;  %v1309_v21 = vld [vmem:[%s2280_s3] ss:$0 sm:$0xff]  ;;  %s2142_s3 = sld [smem:[#allocation3]]  ;;  %v1644_v4 = vld [vmem:[#allocation10 + $0x28] sm:$0xff]  }
  0x92   :  { %v1641_v1 = vld [vmem:[#allocation10 + $0x10] sm:$0xff]   ;;  %1621 = vset.pattern.permute.xlu0 %v1899_v17  ;;  %1622 = vset.pattern.permute.xlu1 %v1899_v17  ;;  %v1657_v40 = vld [vmem:[#allocation12 + $0x28] sm:$0xff]  }
  0x94   :  { %1462 = vmatpush3.bf16.msra.mxu1 %v1627_v5  ;;  %1442 = vmatpush3.bf16.msra.mxu0 %v1628_v6  ;;  %v1645_v5 = vld [vmem:[#allocation10 + $0x30] sm:$0xff]   ;;  %v1646_v6 = vld [vmem:[#allocation10 + $0x38] sm:$0xff]  }
  0x95   :  { %1463 = vmatprep.subr.bf16.mxu1 %v1897_v0  ;;  %1443 = vmatprep.subr.bf16.mxu0 %v1897_v0 }
  0x96   :  { %v160_v46 = vstv %s2145_s5 }
  0x97   :  { %v152_v42 = vstv %s2142_s3  ;;  %vm161_vm2 = vcmp.ge.s32.totalorder %v148_v41, %v160_v46  ;;  %vm163_vm6 = vcmp.lt.s32.totalorder %v2147_v43, %v160_v46 }
  0x98   :  { %1464 = vmatpush3.bf16.msra.mxu1 %v1629_v7  ;;  %1444 = vmatpush3.bf16.msra.mxu0 %v1630_v8  ;;  %vm153_vm1 = vcmp.ge.s32.totalorder %v148_v41, %v152_v42  ;;  %v162_v52 = vsel %vm161_vm2, -1e+12, %v1897_v0  ;;  %vm155_vm5 = vcmp.lt.s32.totalorder %v2147_v43, %v152_v42 }
  0x99   :  { %1465 = vmatprep.subr.bf16.mxu1 %v1897_v0  ;;  %1445 = vmatprep.subr.bf16.mxu0 %v1897_v0  ;;  %v154_v45 = vsel %vm153_vm1, -1e+12, %v1897_v0  ;;  %v2161_v55 = vrot.slane %v162_v52, %v515_v44  ;;  %v1652_v52 = vld [vmem:[#allocation13 + $0x10] sm:$0xff]  }
  0x9a   :  { %v2154_v47 = vrot.slane %v154_v45, %v515_v44 }
  0x9c   :  { %1466 = vmatpush3.bf16.msra.mxu1 %v1631_v9  ;;  %1446 = vmatpush3.bf16.msra.mxu0 %v1632_v10 }
  0x9d   :  { %1467 = vmatprep.subr.bf16.mxu1 %v1897_v0  ;;  %1447 = vmatprep.subr.bf16.mxu0 %v1897_v0 }
  0xa0   :  { %1468 = vmatpush3.bf16.msra.mxu1 %v1633_v11  ;;  %1448 = vmatpush3.bf16.msra.mxu0 %v1634_v12 }
  0xa1   :  { %1469 = vmatprep.subr.bf16.mxu1 %v1897_v0  ;;  %1449 = vmatprep.subr.bf16.mxu0 %v1897_v0 }
  0xa4   :  { %1470 = vmatpush3.bf16.msra.mxu1 %v1635_v13  ;;  %1450 = vmatpush3.bf16.msra.mxu0 %v1636_v14 }
  0xa5   :  { %1471 = vmatprep.subr.bf16.mxu1 %v1897_v0  ;;  %1451 = vmatprep.subr.bf16.mxu0 %v1897_v0 }
  0xa8   :  { %1472 = vmatpush3.bf16.msra.mxu1 %v1637_v15  ;;  %1452 = vmatpush3.bf16.msra.mxu0 %v1638_v18  ;;  %v1327_v18 = vld [vmem:[%s2284_s7] ss:$0 sm:$0xff] }
  0xa9   :  { %1497 = vmatprep.subr.bf16.mxu1 %v1897_v0  ;;  %1477 = vmatprep.subr.bf16.mxu0 %v1897_v0 }
  0xab   :  { %1474 = vmatmul.mubr.bf16.vlgmr.msra.gmra.mrb[0].mxu1 %v2120_v19  ;;  %1454 = vmatmul.mubr.bf16.vlgmr.msra.gmra.mrb[0].mxu0 %v2120_v19 }
  0xac   :  { %1499 = vmatprep.mubr.msk.bf16.mxu1 %vm1898_vm0, %v1897_v0  ;;  %1493 = vmatprep.mubr.msk.bf16.mxu0 %vm1898_vm0, %v1897_v0 }
  0xad   :  { %1478 = vmatpush3.bf16.msra.mxu0 %v1639_v62 }
  0xae   :  { %1479 = vmatprep.subr.bf16.mxu0 %v1897_v0 }
  0xb1   :  { %1480 = vmatpush3.bf16.msra.mxu0 %v1640_v63 }
  0xb2   :  { %1481 = vmatprep.subr.bf16.mxu0 %v1897_v0 }
  0xb5   :  { %1482 = vmatpush3.bf16.msra.mxu0 %v1641_v1 }
  0xb6   :  { %1483 = vmatprep.subr.bf16.mxu0 %v1897_v0 }
  0xb9   :  { %1484 = vmatpush3.bf16.msra.mxu0 %v1642_v2 }
  0xba   :  { %1485 = vmatprep.subr.bf16.mxu0 %v1897_v0 }
  0xbd   :  { %1486 = vmatpush3.bf16.msra.mxu0 %v1643_v3  ;;  %v1663_v3 = vld [vmem:[#allocation15] sm:$0xff]  }
  0xbe   :  { %1487 = vmatprep.subr.bf16.mxu0 %v1897_v0 }
  0xc1   :  { %1488 = vmatpush3.bf16.msra.mxu0 %v1644_v4 }
  0xc2   :  { %1489 = vmatprep.subr.bf16.mxu0 %v1897_v0 }
  0xc5   :  { %1490 = vmatpush3.bf16.msra.mxu0 %v1645_v5 }
  0xc6   :  { %1491 = vmatprep.subr.bf16.mxu0 %v1897_v0 }
  0xc9   :  { %1492 = vmatpush3.bf16.msra.mxu0 %v1646_v6 }
  0xca   :  { %1521 = vmatprep.subr.bf16.mxu0 %v1897_v0 }
  0xcc   :  { %1494 = vmatmul.mubr.bf16.vlgmr.msra.gmra.mrb[4].mxu0 %v2120_v19 }
  0xcd   :  { %1537 = vmatprep.mubr.msk.bf16.mxu0 %vm1898_vm0, %v1897_v0 }
 0x17e   :  { %v386_v22 = vpop.f32.mrb[0].mxu1  ;;  %v274_v25 = vpop.f32.mrb[0].mxu0 }
 0x17f   :  { %v387_v23 = vadd.f32 %v1318_v20, %v386_v22  ;;  %v1475_v24 = vpop.f32.mrb[1].mxu1  ;;  %v275_v26 = vadd.f32 %v1309_v21, %v274_v25  ;;  %v1455_v28 = vpop.f32.mrb[1].mxu0 }
 0x180   :  { %v389_v27 = vpop.f32.mrb[2].mxu1  ;;  %v277_v31 = vpop.f32.mrb[2].mxu0 }
 0x181   :  { %v509_v29 = vpack.c.bf16 %v387_v23, %v387_v23  ;;  %v1476_v30 = vpop.f32.mrb[3].mxu1  ;;  %v505_v32 = vmul.f32 0.17677669, %v275_v26  ;;  %v1456_v33 = vpop.f32.mrb[3].mxu0  ;;  %v390_v34 = vadd.f32 %v1318_v20, %v389_v27  ;;  %v278_v36 = vadd.f32 %v1309_v21, %v277_v31 }
 0x183   :  { %1498 = vmatpush3.bf16.xpose.msra.mxu1 %v509_v29  ;;  %v507_v35 = vpack.c.bf16 %v505_v32, %v505_v32  ;;  %v510_v37 = vpack.c.bf16 %v390_v34, %v390_v34  ;;  %v506_v38 = vmul.f32 0.17677669, %v278_v36  ;;  %v2187_v29 = vsel %vm155_vm5, 1.0, %v1897_v0  ;;  %v1649_v36 = vld [vmem:[#allocation12 + $0x8] sm:$0xff]  }
 0x184   :  { %1503 = vmatprep.subr.bf16.mxu1 %v1897_v0  ;;  %v2194_v32 = vsel %vm163_vm6, 1.0, %v1897_v0 }
 0x185   :  { %v508_v39 = vpack.c.bf16 %v506_v38, %v506_v38  ;;  %v1653_v38 = vld [vmem:[#allocation12 + $0x18] sm:$0xff]  }
 0x18a   :  { %1500 = vmatmul.mubr.bf16.vlgmr.msra.gmra.mrb[4].mxu1 %v507_v35  ;;  %v1647_v35 = vld [vmem:[#allocation12] sm:$0xff]  }
 0x18b   :  { %1504 = vmatpush3.bf16.xpose.msra.mxu1 %v510_v37  ;;  %1505 = vmatprep.mubr.msk.bf16.mxu1 %vm1898_vm0, %v1897_v0  ;;  %v1651_v37 = vld [vmem:[#allocation12 + $0x10] sm:$0xff]  }
 0x18c   :  { %1509 = vmatprep.subr.bf16.mxu1 %v1897_v0  ;;  %1522 = vmatpush3.bf16.msra.mxu0 %v1647_v35 }
 0x18d   :  { %1523 = vmatprep.subr.bf16.mxu0 %v1897_v0 }
 0x190   :  { %1524 = vmatpush3.bf16.msra.mxu0 %v1649_v36 }
 0x191   :  { %1525 = vmatprep.subr.bf16.mxu0 %v1897_v0 }
 0x192   :  { %1506 = vmatmul.mubr.bf16.vlgmr.msra.gmra.mrb[8].mxu1 %v508_v39  ;;  %v1655_v39 = vld [vmem:[#allocation12 + $0x20] sm:$0xff]  }
 0x193   :  { %1511 = vmatprep.mubr.msk.bf16.mxu1 %vm1898_vm0, %v1897_v0 }
 0x194   :  { %1526 = vmatpush3.bf16.msra.mxu0 %v1651_v37  ;;  %v1356_v37 = vld [vmem:[%s2290_s13] ss:$0 sm:$0xff]  ;;  %s1900_s13 = smov [#allocation16]  }
 0x195   :  { %1527 = vmatprep.subr.bf16.mxu0 %v1897_v0  ;;  %s1291_s28 = sshll.u32 %s1900_s13, 4  ;;  %s1292_s28 = int_to_ptr.vmem [resolvable:$true] %s1291_s28 }
 0x196   :  { %s1851_s24 = scalar_lea.vmem %s1292_s28, 256  ;;  %p1856_p4 = scmp.lt.s32.totalorder %s1292_s28, %s1292_s28 }
 0x197   :  { %p1852_p3 = scmp.ne.s32.totalorder %s1292_s28, %s1851_s24  ;;  %p1857_p5 = scmp.lt.s32.totalorder %s1851_s24, %s1851_s24 }
 0x198   :  { %1528 = vmatpush3.bf16.msra.mxu0 %v1653_v38 }
 0x199   :  { %1529 = vmatprep.subr.bf16.mxu0 %v1897_v0  ;;  %p1858_p6 = por %p1857_p5, %p1856_p4 }
 0x19b   :  { %p1859_p7 = pnand %p1858_p6, %p1852_p3 }
 0x19c   :  { %1530 = vmatpush3.bf16.msra.mxu0 %v1655_v39 }
 0x19d   :  { %1531 = vmatprep.subr.bf16.mxu0 %v1897_v0 }
 0x19f   :  { %v498_v19 = vpop.f32.mrb[4].mxu0 }
 0x1a0   :  { %v499_v20 = vadd.f32 %v1327_v18, %v498_v19  ;;  %v1495_v21 = vpop.f32.mrb[5].mxu0  ;;  %1532 = vmatpush3.bf16.msra.mxu0 %v1657_v40 }
 0x1a1   :  { %v501_v22 = vpop.f32.mrb[6].mxu0  ;;  %1533 = vmatprep.subr.bf16.mxu0 %v1897_v0 }
 0x1a2   :  { %v511_v23 = vpack.c.bf16 %v499_v20, %v499_v20  ;;  %v502_v24 = vadd.f32 %v1327_v18, %v501_v22  ;;  %v1496_v25 = vpop.f32.mrb[7].mxu0 }
 0x1a4   :  { %v643_v26 = vsel %vm641_vm4, %v511_v23, 0  ;;  %v512_v42 = vpack.c.bf16 %v502_v24, %v502_v24 }
 0x1a5   :  { %1510 = vmatpush3.bf16.msra.mxu1 %v643_v26 }
 0x1a6   :  { %1515 = vmatprep.subr.bf16.mxu1 %v1897_v0  ;;  %v689_v45 = vsel %vm641_vm4, %v512_v42, 0 }
 0x25d   :  { %v555_v48 = vpop.f32.mrb[4].mxu1 }
 0x25e   :  { %v556_v49 = vadd.f32 %v555_v48, %v2154_v47  ;;  %v1501_v50 = vpop.f32.mrb[5].mxu1 }
 0x25f   :  { %v558_v51 = vpop.f32.mrb[6].mxu1 }
 0x260   :  { %v1502_v53 = vpop.f32.mrb[7].mxu1  ;;  %v602_v54 = vsel %vm601_vm3, %v556_v49, -inf  ;;  %v1650_v51 = vld [vmem:[#allocation13 + $0x8] sm:$0xff]  }
 0x261   :  { %603 = vmax.xlane.f32.xlu0 %v602_v54  ;;  %v1654_v53 = vld [vmem:[#allocation13 + $0x18] sm:$0xff]   ;;  %v1656_v54 = vld [vmem:[#allocation13 + $0x20] sm:$0xff]  }
 0x265   :  { %v595_v56 = vpop.f32.mrb[8].mxu1 }
 0x266   :  { %v596_v57 = vadd.f32 %v595_v56, %v2161_v55  ;;  %v1507_v58 = vpop.f32.mrb[9].mxu1  ;;  %v1658_v56 = vld [vmem:[#allocation13 + $0x28] sm:$0xff]  }
 0x267   :  { %v598_v59 = vpop.f32.mrb[10].mxu1  ;;  %v1660_v58 = vld [vmem:[#allocation13 + $0x30] sm:$0xff]  }
 0x268   :  { %v1508_v60 = vpop.f32.mrb[11].mxu1  ;;  %v605_v61 = vsel %vm601_vm3, %v596_v57, -inf  ;;  %v1661_v59 = vld [vmem:[#allocation12 + $0x38] sm:$0xff]  }
 0x269   :  { %606 = vmax.xlane.f32.xlu0 %v605_v61  ;;  %v1662_v60 = vld [vmem:[#allocation13 + $0x38] sm:$0xff]  }
 0x2ee   :  { %v604_v7 = vpop.xlane.xlu0 %603 }
 0x2ef   :  { %v608_v8 = vsub.f32 %v556_v49, %v604_v7  ;;  %v1648_v49 = vld [vmem:[#allocation13] sm:$0xff]  }
 0x2f1   :  { %v610_v9 = vmul.f32 1.442695, %v608_v8  ;;  %v1664_v8 = vld [vmem:[#allocation15 + $0x8] sm:$0xff]  }
 0x2f3   :  { %1671 = vpow2.f32 %v610_v9  ;;  %v1665_v9 = vld [vmem:[#allocation15 + $0x10] sm:$0xff]  }
 0x2f6   :  { %v607_v10 = vpop.xlane.xlu0 %606 }
 0x2f7   :  { %v609_v11 = vsub.f32 %v596_v57, %v607_v10  ;;  %v1659_v57 = vld [vmem:[#allocation12 + $0x30] sm:$0xff]   ;;  %v1666_v10 = vld [vmem:[#allocation15 + $0x18] sm:$0xff]  }
 0x2f8   :  { %1534 = vmatpush3.bf16.msra.mxu0 %v1659_v57 }
 0x2f9   :  { %v612_v12 = vmul.f32 1.442695, %v609_v11  ;;  %1535 = vmatprep.subr.bf16.mxu0 %v1897_v0  ;;  %v1667_v11 = vld [vmem:[#allocation15 + $0x20] sm:$0xff]  }
 0x2fb   :  { %1673 = vpow2.f32 %v612_v12  ;;  %v1668_v12 = vld [vmem:[#allocation15 + $0x28] sm:$0xff]  }
 0x2fc   :  { %1536 = vmatpush3.bf16.msra.mxu0 %v1661_v59 }
 0x2fd   :  { %v1672_v13 = vpop.eup %1671  ;;  %1561 = vmatprep.subr.bf16.mxu0 %v1897_v0 }
 0x2fe   :  { %v614_v14 = vsel %vm601_vm3, %v1672_v13, 0.0 }
 0x2ff   :  { %615 = vadd.xlane.f32.xlu1 %v614_v14  ;;  %v1670_v14 = vld [vmem:[#allocation15 + $0x38] sm:$0xff]  }
 0x305   :  { %v1674_v15 = vpop.eup %1673 }
 0x306   :  { %v617_v16 = vsel %vm601_vm3, %v1674_v15, 0.0 }
 0x307   :  { %618 = vadd.xlane.f32.xlu1 %v617_v16  ;;  %v1338_v16 = vld [vmem:[%s2286_s9] ss:$0 sm:$0xff] }
 0x38c   :  { %v616_v27 = vpop.xlane.xlu1 %615 }
 0x38d   :  { %1675 = vrcp.f32 %v616_v27 }
 0x394   :  { %v619_v28 = vpop.xlane.xlu1 %618 }
 0x395   :  { %1677 = vrcp.f32 %v619_v28 }
 0x397   :  { %v1676_v30 = vpop.eup %1675 }
 0x398   :  { %v622_v31 = vmul.f32 %v1676_v30, %v2187_v29 }
 0x39a   :  { %626 = vperm.xlu0 %1621, %v622_v31  }
 0x39f   :  { %v1678_v33 = vpop.eup %1677 }
 0x3a0   :  { %v623_v34 = vmul.f32 %v1678_v33, %v2194_v32 }
 0x3a2   :  { %631 = vperm.xlu1 %1622, %v623_v34  }
 0x419   :  { %v627_v41 = vpop.permute.xlu0 %626 }
 0x41a   :  { %v634_v43 = vmul.f32 %v1672_v13, %v627_v41  ;;  %v1669_v13 = vld [vmem:[#allocation15 + $0x30] sm:$0xff]  }
 0x41c   :  { %v636_v44 = vpack.c.bf16 %v634_v43, %v634_v43 }
 0x41e   :  { %1512 = vmatmul.mubr.msk.bf16.vlgmr.msra.gmra.mrb[12].mxu1 %vm601_vm3, %v636_v44 }
 0x41f   :  { %1516 = vmatpush3.bf16.msra.mxu1 %v689_v45  ;;  %1517 = vmatprep.mubr.msk.bf16.mxu1 %vm1898_vm0, %v1897_v0 }
 0x420   :  { %1541 = vmatprep.subr.bf16.mxu1 %v1897_v0 }
 0x421   :  { %v632_v46 = vpop.permute.xlu1 %631 }
 0x422   :  { %v635_v48 = vmul.f32 %v1674_v15, %v632_v46  ;;  %v1347_v15 = vld [vmem:[%s2288_s11] ss:$0 sm:$0xff] }
 0x424   :  { %v637_v50 = vpack.c.bf16 %v635_v48, %v635_v48 }
 0x426   :  { %1518 = vmatmul.mubr.msk.bf16.vlgmr.msra.gmra.mrb[16].mxu1 %vm601_vm3, %v637_v50 }
 0x427   :  { %1542 = vmatpush3.bf16.msra.mxu1 %v1648_v49  ;;  %1557 = vmatprep.mubr.msk.bf16.mxu1 %vm1898_vm0, %v1897_v0 }
 0x428   :  { %1543 = vmatprep.subr.bf16.mxu1 %v1897_v0 }
 0x42b   :  { %1544 = vmatpush3.bf16.msra.mxu1 %v1650_v51 }
 0x42c   :  { %1545 = vmatprep.subr.bf16.mxu1 %v1897_v0 }
 0x42f   :  { %1546 = vmatpush3.bf16.msra.mxu1 %v1652_v52 }
 0x430   :  { %1547 = vmatprep.subr.bf16.mxu1 %v1897_v0 }
 0x433   :  { %1548 = vmatpush3.bf16.msra.mxu1 %v1654_v53 }
 0x434   :  { %1549 = vmatprep.subr.bf16.mxu1 %v1897_v0 }
 0x437   :  { %1550 = vmatpush3.bf16.msra.mxu1 %v1656_v54 }
 0x438   :  { %1551 = vmatprep.subr.bf16.mxu1 %v1897_v0 }
 0x43b   :  { %1552 = vmatpush3.bf16.msra.mxu1 %v1658_v56 }
 0x43c   :  { %1553 = vmatprep.subr.bf16.mxu1 %v1897_v0 }
 0x43f   :  { %1554 = vmatpush3.bf16.msra.mxu1 %v1660_v58 }
 0x440   :  { %1555 = vmatprep.subr.bf16.mxu1 %v1897_v0 }
 0x443   :  { %1556 = vmatpush3.bf16.msra.mxu1 %v1662_v60 }
 0x444   :  { %1581 = vmatprep.subr.bf16.mxu1 %v1897_v0 }
 0x4f1   :  { %v679_v61 = vpop.f32.mrb[12].mxu1 }
 0x4f2   :  { %v1513_v62 = vpop.f32.mrb[13].mxu1 }
 0x4f3   :  { %v682_v63 = vpop.f32.mrb[14].mxu1 }
 0x4f4   :  { %v1514_v1 = vpop.f32.mrb[15].mxu1 }
 0x4f9   :  { %v725_v2 = vpop.f32.mrb[16].mxu1 }
 0x4fa   :  { %v731_v4 = vpack.c.bf16 %v725_v2, %v679_v61  ;;  %v1519_v5 = vpop.f32.mrb[17].mxu1 }
 0x4fb   :  { %v728_v6 = vpop.f32.mrb[18].mxu1 }
 0x4fc   :  { %v1520_v7 = vpop.f32.mrb[19].mxu1  ;;  %1538 = vmatmul.mubr.bf16.vlgmr.msra.gmra.mrb[8].mxu0 %v731_v4  ;;  %1558 = vmatmul.mubr.bf16.vlgmr.msra.gmra.mrb[20].mxu1 %v731_v4 }
 0x4fd   :  { %1562 = vmatpush3.bf16.msra.mxu0 %v1663_v3  ;;  %1577 = vmatprep.mubr.msk.bf16.mxu0 %vm1898_vm0, %v1897_v0 }
 0x4fe   :  { %1563 = vmatprep.subr.bf16.mxu0 %v1897_v0  ;;  %1583 = vmatprep.mubr.msk.bf16.mxu1 %vm1898_vm0, %v1897_v0 }
 0x501   :  { %1564 = vmatpush3.bf16.msra.mxu0 %v1664_v8 }
 0x502   :  { %1565 = vmatprep.subr.bf16.mxu0 %v1897_v0 }
 0x505   :  { %1566 = vmatpush3.bf16.msra.mxu0 %v1665_v9 }
 0x506   :  { %1567 = vmatprep.subr.bf16.mxu0 %v1897_v0 }
 0x509   :  { %1568 = vmatpush3.bf16.msra.mxu0 %v1666_v10 }
 0x50a   :  { %1569 = vmatprep.subr.bf16.mxu0 %v1897_v0 }
 0x50d   :  { %1570 = vmatpush3.bf16.msra.mxu0 %v1667_v11 }
 0x50e   :  { %1571 = vmatprep.subr.bf16.mxu0 %v1897_v0 }
 0x511   :  { %1572 = vmatpush3.bf16.msra.mxu0 %v1668_v12 }
 0x512   :  { %1573 = vmatprep.subr.bf16.mxu0 %v1897_v0 }
 0x515   :  { %1574 = vmatpush3.bf16.msra.mxu0 %v1669_v13 }
 0x516   :  { %1575 = vmatprep.subr.bf16.mxu0 %v1897_v0 }
 0x519   :  { %1576 = vmatpush3.bf16.msra.mxu0 %v1670_v14 }
 0x51c   :  { %1578 = vmatmul.mubr.bf16.vlgmr.msra.gmra.mrb[12].mxu0 %v731_v4 }
 0x5cf   :  { %v837_v17 = vpop.f32.mrb[8].mxu0  ;;  %v949_v18 = vpop.f32.mrb[20].mxu1 }
 0x5d0   :  { %v950_v19 = vadd.f32 %v1347_v15, %v949_v18  ;;  %v1539_v20 = vpop.f32.mrb[9].mxu0  ;;  %v1559_v21 = vpop.f32.mrb[21].mxu1  ;;  %v838_v22 = vadd.f32 %v1338_v16, %v837_v17 }
 0x5d1   :  { %v840_v23 = vpop.f32.mrb[10].mxu0  ;;  %v952_v24 = vpop.f32.mrb[22].mxu1 }
 0x5d2   :  { %v1072_v25 = vpack.c.bf16 %v950_v19, %v950_v19  ;;  %v1540_v26 = vpop.f32.mrb[11].mxu0  ;;  %v1560_v27 = vpop.f32.mrb[23].mxu1  ;;  %v1068_v28 = vmul.f32 0.17677669, %v838_v22  ;;  %v953_v30 = vadd.f32 %v1347_v15, %v952_v24  ;;  %v841_v33 = vadd.f32 %v1338_v16, %v840_v23 }
 0x5d4   :  { %1582 = vmatpush3.bf16.xpose.msra.mxu1 %v1072_v25  ;;  %v1070_v31 = vpack.c.bf16 %v1068_v28, %v1068_v28  ;;  %v1073_v34 = vpack.c.bf16 %v953_v30, %v953_v30  ;;  %v1069_v35 = vmul.f32 0.17677669, %v841_v33 }
 0x5d5   :  { %1587 = vmatprep.subr.bf16.mxu1 %v1897_v0 }
 0x5d6   :  { %v1071_v36 = vpack.c.bf16 %v1069_v35, %v1069_v35 }
 0x5db   :  { %1584 = vmatmul.mubr.bf16.vlgmr.msra.gmra.mrb[24].mxu1 %v1070_v31 }
 0x5dc   :  { %1588 = vmatpush3.bf16.xpose.msra.mxu1 %v1073_v34  ;;  %1589 = vmatprep.mubr.msk.bf16.mxu1 %vm1898_vm0, %v1897_v0 }
 0x5dd   :  { %1593 = vmatprep.subr.bf16.mxu1 %v1897_v0 }
 0x5e3   :  { %1590 = vmatmul.mubr.bf16.vlgmr.msra.gmra.mrb[28].mxu1 %v1071_v36 }
 0x5e4   :  { %1595 = vmatprep.mubr.msk.bf16.mxu1 %vm1898_vm0, %v1897_v0 }
 0x5ef   :  { %v1061_v38 = vpop.f32.mrb[12].mxu0 }
 0x5f0   :  { %v1062_v39 = vadd.f32 %v1356_v37, %v1061_v38  ;;  %v1579_v40 = vpop.f32.mrb[13].mxu0 }
 0x5f1   :  { %v1064_v41 = vpop.f32.mrb[14].mxu0 }
 0x5f2   :  { %v1074_v42 = vpack.c.bf16 %v1062_v39, %v1062_v39  ;;  %v1065_v43 = vadd.f32 %v1356_v37, %v1064_v41  ;;  %v1580_v44 = vpop.f32.mrb[15].mxu0 }
 0x5f4   :  { %v1196_v45 = vsel %vm641_vm4, %v1074_v42, 0  ;;  %v1075_v12 = vpack.c.bf16 %v1065_v43, %v1065_v43 }
 0x5f5   :  { %1594 = vmatpush3.bf16.msra.mxu1 %v1196_v45 }
 0x5f6   :  { %1599 = vmatprep.subr.bf16.mxu1 %v1897_v0  ;;  %v1242_v15 = vsel %vm641_vm4, %v1075_v12, 0 }
 0x6ae   :  { %v1110_v46 = vpop.f32.mrb[24].mxu1 }
 0x6af   :  { %v1111_v48 = vadd.f32 %v1110_v46, %v2154_v47  ;;  %v1585_v49 = vpop.f32.mrb[25].mxu1 }
 0x6b0   :  { %v1113_v50 = vpop.f32.mrb[26].mxu1 }
 0x6b1   :  { %v1586_v51 = vpop.f32.mrb[27].mxu1  ;;  %v1156_v52 = vsel %vm601_vm3, %v1111_v48, -inf }
 0x6b2   :  { %1157 = vmax.xlane.f32.xlu1 %v1156_v52 }
 0x6b6   :  { %v1150_v53 = vpop.f32.mrb[28].mxu1 }
 0x6b7   :  { %v1151_v54 = vadd.f32 %v1150_v53, %v2161_v55  ;;  %v1591_v56 = vpop.f32.mrb[29].mxu1 }
 0x6b8   :  { %v1153_v57 = vpop.f32.mrb[30].mxu1 }
 0x6b9   :  { %v1592_v58 = vpop.f32.mrb[31].mxu1  ;;  %v1159_v59 = vsel %vm601_vm3, %v1151_v54, -inf }
 0x6ba   :  { %1160 = vmax.xlane.f32.xlu0 %v1159_v59 }
 0x73f   :  { %v1158_v60 = vpop.xlane.xlu1 %1157 }
 0x740   :  { %v1162_v61 = vsub.f32 %v1111_v48, %v1158_v60 }
 0x742   :  { %v1164_v62 = vmul.f32 1.442695, %v1162_v61 }
 0x744   :  { %1679 = vpow2.f32 %v1164_v62 }
 0x747   :  { %v1161_v47 = vpop.xlane.xlu0 %1160 }
 0x748   :  { %v1163_v63 = vsub.f32 %v1151_v54, %v1161_v47 }
 0x74a   :  { %v1166_v1 = vmul.f32 1.442695, %v1163_v63 }
 0x74c   :  { %1681 = vpow2.f32 %v1166_v1 }
 0x74e   :  { %v1680_v2 = vpop.eup %1679 }
 0x74f   :  { %v1168_v3 = vsel %vm601_vm3, %v1680_v2, 0.0 }
 0x750   :  { %1169 = vadd.xlane.f32.xlu1 %v1168_v3 }
 0x756   :  { %v1682_v4 = vpop.eup %1681 }
 0x757   :  { %v1171_v55 = vsel %vm601_vm3, %v1682_v4, 0.0 }
 0x758   :  { %1172 = vadd.xlane.f32.xlu1 %v1171_v55 }
 0x7dd   :  { %v1170_v5 = vpop.xlane.xlu1 %1169 }
 0x7de   :  { %1683 = vrcp.f32 %v1170_v5 }
 0x7e5   :  { %v1173_v6 = vpop.xlane.xlu1 %1172 }
 0x7e6   :  { %1685 = vrcp.f32 %v1173_v6 }
 0x7e8   :  { %v1684_v7 = vpop.eup %1683 }
 0x7e9   :  { %v1176_v8 = vmul.f32 %v1684_v7, %v2187_v29 }
 0x7eb   :  { %1180 = vperm.xlu1 %1622, %v1176_v8  }
 0x7f0   :  { %v1686_v9 = vpop.eup %1685 }
 0x7f1   :  { %v1177_v10 = vmul.f32 %v1686_v9, %v2194_v32 }
 0x7f3   :  { %1185 = vperm.xlu0 %1621, %v1177_v10  }
 0x86a   :  { %v1181_v11 = vpop.permute.xlu1 %1180 }
 0x86b   :  { %v1188_v13 = vmul.f32 %v1680_v2, %v1181_v11 }
 0x86d   :  { %v1190_v14 = vpack.c.bf16 %v1188_v13, %v1188_v13 }
 0x86f   :  { %1596 = vmatmul.mubr.msk.bf16.vlgmr.msra.gmra.mrb[32].mxu1 %vm601_vm3, %v1190_v14 }
 0x870   :  { %1600 = vmatpush3.bf16.msra.mxu1 %v1242_v15  ;;  %1601 = vmatprep.mubr.msk.bf16.mxu1 %vm1898_vm0, %v1897_v0 }
 0x872   :  { %v1186_v16 = vpop.permute.xlu0 %1185 }
 0x873   :  { %v1189_v17 = vmul.f32 %v1682_v4, %v1186_v16 }
 0x875   :  { %v1191_v29 = vpack.c.bf16 %v1189_v17, %v1189_v17 }
 0x877   :  { %1602 = vmatmul.mubr.msk.bf16.vlgmr.msra.gmra.mrb[36].mxu1 %vm601_vm3, %v1191_v29 }
 0x942   :  { %v1232_v18 = vpop.f32.mrb[32].mxu1 }
 0x943   :  { %1284 = vst [vmem:[#allocation16] sm:$0xff] %v1232_v18  ;;  %v1597_v32 = vpop.f32.mrb[33].mxu1 }
 0x944   :  { %v1235_v19 = vpop.f32.mrb[34].mxu1 }
 0x945   :  { %v1598_v20 = vpop.f32.mrb[35].mxu1 }
 0x94a   :  { %v1278_v21 = vpop.f32.mrb[36].mxu1 }
 0x94b   :  { %1285 = vst [vmem:[#allocation16 + $0x8] sm:$0xff] %v1278_v21  ;;  %v1603_v22 = vpop.f32.mrb[37].mxu1 }
 0x94c   :  { %v1281_v23 = vpop.f32.mrb[38].mxu1 }
 0x94d   :  { %1862 = shalt.err (!%p1859_p7)
}
 0x94e   :  { %s1863_s19 = scalar_lea.hbm %s2291_s14, 256 }
 0x94f   :  { %p1864_p8 = scmp.ne.s32.totalorder %s2291_s14, %s1863_s19  ;;  %p1867_p9 = scmp.lt.u32.totalorder %s1863_s19, %s2291_s14 }
 0x951   :  { %p1869_p10 = pnand %p1867_p9, %p1864_p8 }
 0x953   :  { %1872 = shalt.err (!%p1869_p10)
}
 0x954   :  { %1297 = dma.vmem_to_hbm [thread:$0]  %s1292_s28, 256, %s2291_s14, [#allocation6], %s1892_s10, %s1892_s10, %s1893_s23   ;;  %v1604_v0 = vpop.f32.mrb[39].mxu1 }
 0x955   :  { %1883 = dma.done.wait [#allocation6], 256  }
 0x956   :  { %1884 = vsyncadd [#allocation6], 4294967040 }
 0x957   :  { %1301 = vsyncpa [#allocation5], 1 }
 0x958   :  { %1302 = vsyncpa [#allocation8], 1 }
 0x959   :  { %1303 = vsyncpa [#allocation11], 1 }
 0x95a   :  { %1304 = vsyncpa [#allocation14], 1 }
 0x95b   :  { %1305 = vsyncpa [#allocation6], 1 }

// kernel: tpu_custom_call.1
= control target key start
LH: loop header
LB: loop body
LE: loop exit
PB: predicated region body
PF: predicated region fallthrough
CT: control target
= control target key end

     0   :  { %s2277_s0 = inlined_call_operand.hbm [shape: s32[2], index: 0, kind: input, shape index: {}]   ;;  %s2278_s1 = inlined_call_operand.hbm [shape: f32[2,8,128], index: 1, kind: input, shape index: {}]   ;;  %s2279_s2 = inlined_call_operand.hbm [shape: bf16[128,128], index: 2, kind: input, shape index: {}]   ;;  %s2280_s3 = inlined_call_operand.vmem [shape: f32[1,128], index: 3, kind: input, shape index: {}]   ;;  %s2281_s4 = inlined_call_operand.hbm [shape: bf16[128,128], index: 4, kind: input, shape index: {}]   ;;  %s2282_s5 = inlined_call_operand.vmem [shape: f32[1,128], index: 5, kind: input, shape index: {}]   ;;  %s2283_s6 = inlined_call_operand.hbm [shape: bf16[128,128], index: 6, kind: input, shape index: {}]   ;;  %s2284_s7 = inlined_call_operand.vmem [shape: f32[1,128], index: 7, kind: input, shape index: {}]   ;;  %s2285_s8 = inlined_call_operand.hbm [shape: bf16[128,128], index: 8, kind: input, shape index: {}]   ;;  %s2286_s9 = inlined_call_operand.vmem [shape: f32[1,128], index: 9, kind: input, shape index: {}]   ;;  %s2287_s10 = inlined_call_operand.hbm [shape: bf16[128,128], index: 10, kind: input, shape index: {}]   ;;  %s2288_s11 = inlined_call_operand.vmem [shape: f32[1,128], index: 11, kind: input, shape index: {}]   ;;  %s2289_s12 = inlined_call_operand.hbm [shape: bf16[128,128], index: 12, kind: input, shape index: {}]   ;;  %s2290_s13 = inlined_call_operand.vmem [shape: f32[1,128], index: 13, kind: input, shape index: {}]   ;;  %s2291_s14 = inlined_call_operand.hbm [shape: f32[2,8,128], index: 14, kind: output, shape index: {}]  }
   0x1   :  { %s1687_s15 = scalar_lea.hbm %s2277_s0, 16 }
   0x2   :  { %p1688_p0 = scmp.ne.s32.totalorder %s2277_s0, %s1687_s15  ;;  %p1691_p1 = scmp.lt.u32.totalorder %s1687_s15, %s2277_s0 }
   0x4   :  { %p1693_p2 = pnand %p1691_p1, %p1688_p0 }
   0x6   :  { %1696 = shalt.err (!%p1693_p2)  }
   0x7   :  { %s1885_s20 = smov [#allocation3]  }
   0x8   :  { %20 = dma.hbm_to_smem %s2277_s0, 16, %s1885_s20, [#allocation2] }
   0x9   :  { %1873 = dma.done.wait [#allocation2], 16 }
   0xa   :  { %1874 = vsyncadd [#allocation2], 4294967280 }
   0xb   :  { %22 = sfence }
   0xc   :  { %23 = vsyncpa [#allocation5], 0 }
   0xd   :  { %24 = vsyncpa [#allocation8], 0 }
   0xe   :  { %25 = vsyncpa [#allocation11], 0 }
   0xf   :  { %26 = vsyncpa [#allocation14], 0 }
  0x10   :  { %27 = vsyncpa [#allocation6], 0  ;;  %s1886_s23 = smov [#allocation7]   ;;  %s1697_s27 = scalar_lea.hbm %s2279_s2, 1024 }
  0x11   :  { %s45_s24 = sshll.u32 %s1886_s23, 4  ;;  %p1698_p3 = scmp.ne.s32.totalorder %s2279_s2, %s1697_s27  ;;  %s46_s24 = int_to_ptr.vmem [resolvable:$true] %s45_s24 }
  0x12   :  { %p1701_p4 = scmp.lt.u32.totalorder %s1697_s27, %s2279_s2 }
  0x14   :  { %p1703_p5 = pnand %p1701_p4, %p1698_p3 }
  0x16   :  { %1706 = shalt.err (!%p1703_p5)
}
  0x17   :  { %s1707_s15 = scalar_lea.vmem %s46_s24, 1024  ;;  %p1712_p7 = scmp.lt.s32.totalorder %s46_s24, %s46_s24 }
  0x18   :  { %p1708_p6 = scmp.ne.s32.totalorder %s46_s24, %s1707_s15  ;;  %p1713_p8 = scmp.lt.s32.totalorder %s1707_s15, %s1707_s15 }
  0x1a   :  { %p1714_p9 = por %p1713_p8, %p1712_p7 }
  0x1c   :  { %p1715_p10 = pnand %p1714_p9, %p1708_p6 }
  0x1e   :  { %1718 = shalt.err (!%p1715_p10)
}
  0x1f   :  { %s1887_s16 = smov 64   ;;  %s1888_s17 = smov 4  }
  0x20   :  { %51 = dma.hbm_to_vmem [thread:$0]  %s2279_s2, 1024, %s46_s24, [#allocation8], %s1887_s16, %s1887_s16, %s1888_s17  }
  0x21   :  { %s1889_s20 = smov [#allocation10]   ;;  %s1890_s22 = smov [#allocation13]  }
  0x22   :  { %s73_s21 = sshll.u32 %s1889_s20, 4  ;;  %s101_s23 = sshll.u32 %s1890_s22, 4  ;;  %s74_s21 = int_to_ptr.vmem [resolvable:$true] %s73_s21  ;;  %s102_s23 = int_to_ptr.vmem [resolvable:$true] %s101_s23 }
  0x23   :  { %s1719_s27 = scalar_lea.hbm %s2283_s6, 1024 }
  0x24   :  { %p1720_p11 = scmp.ne.s32.totalorder %s2283_s6, %s1719_s27  ;;  %p1723_p12 = scmp.lt.u32.totalorder %s1719_s27, %s2283_s6 }
  0x26   :  { %p1725_p13 = pnand %p1723_p12, %p1720_p11 }
  0x28   :  { %1728 = shalt.err (!%p1725_p13)
}
  0x29   :  { %s1729_s2 = scalar_lea.vmem %s74_s21, 1024  ;;  %p1734_p1 = scmp.lt.s32.totalorder %s74_s21, %s74_s21 }
  0x2a   :  { %p1730_p0 = scmp.ne.s32.totalorder %s74_s21, %s1729_s2  ;;  %p1735_p2 = scmp.lt.s32.totalorder %s1729_s2, %s1729_s2 }
  0x2c   :  { %p1736_p3 = por %p1735_p2, %p1734_p1 }
  0x2e   :  { %p1737_p4 = pnand %p1736_p3, %p1730_p0 }
  0x30   :  { %1740 = shalt.err (!%p1737_p4)
}
  0x31   :  { %79 = dma.hbm_to_vmem [thread:$0]  %s2283_s6, 1024, %s74_s21, [#allocation11], %s1887_s16, %s1887_s16, %s1888_s17  }
  0x32   :  { %s1741_s20 = scalar_lea.hbm %s2287_s10, 1024 }
  0x33   :  { %p1742_p5 = scmp.ne.s32.totalorder %s2287_s10, %s1741_s20  ;;  %p1745_p6 = scmp.lt.u32.totalorder %s1741_s20, %s2287_s10 }
  0x35   :  { %p1747_p7 = pnand %p1745_p6, %p1742_p5 }
  0x37   :  { %1750 = shalt.err (!%p1747_p7)
}
  0x38   :  { %s1751_s28 = scalar_lea.vmem %s102_s23, 1024  ;;  %p1756_p9 = scmp.lt.s32.totalorder %s102_s23, %s102_s23 }
  0x39   :  { %p1752_p8 = scmp.ne.s32.totalorder %s102_s23, %s1751_s28  ;;  %p1757_p10 = scmp.lt.s32.totalorder %s1751_s28, %s1751_s28 }
  0x3b   :  { %p1758_p11 = por %p1757_p10, %p1756_p9 }
  0x3d   :  { %p1759_p12 = pnand %p1758_p11, %p1752_p8 }
  0x3f   :  { %1762 = shalt.err (!%p1759_p12)
}
  0x40   :  { %107 = dma.hbm_to_vmem [thread:$0]  %s2287_s10, 1024, %s102_s23, [#allocation14], %s1887_s16, %s1887_s16, %s1888_s17  }
  0x41   :  { %s1891_s29 = smov [#allocation4]   ;;  %s1763_s24 = scalar_lea.hbm %s2278_s1, 256 }
  0x42   :  { %s33_s0 = sshll.u32 %s1891_s29, 4  ;;  %p1764_p13 = scmp.ne.s32.totalorder %s2278_s1, %s1763_s24  ;;  %s34_s0 = int_to_ptr.vmem [resolvable:$true] %s33_s0 }
  0x43   :  { %p1767_p0 = scmp.lt.u32.totalorder %s1763_s24, %s2278_s1 }
  0x45   :  { %p1769_p1 = pnand %p1767_p0, %p1764_p13 }
  0x47   :  { %1772 = shalt.err (!%p1769_p1)
}
  0x48   :  { %s1773_s22 = scalar_lea.vmem %s34_s0, 256  ;;  %p1778_p3 = scmp.lt.s32.totalorder %s34_s0, %s34_s0 }
  0x49   :  { %p1774_p2 = scmp.ne.s32.totalorder %s34_s0, %s1773_s22  ;;  %p1779_p4 = scmp.lt.s32.totalorder %s1773_s22, %s1773_s22 }
  0x4b   :  { %p1780_p5 = por %p1779_p4, %p1778_p3 }
  0x4d   :  { %p1781_p6 = pnand %p1780_p5, %p1774_p2 }
  0x4f   :  { %1784 = shalt.err (!%p1781_p6)
}
  0x50   :  { %s1892_s10 = smov 128   ;;  %s1893_s23 = smov 8  }
  0x51   :  { %39 = dma.hbm_to_vmem [thread:$0]  %s2278_s1, 256, %s34_s0, [#allocation5], %s1892_s10, %s1892_s10, %s1893_s23  }
  0x52   :  { %s1894_s27 = smov [#allocation9]   ;;  %s1895_s6 = smov [#allocation12]  }
  0x53   :  { %s59_s28 = sshll.u32 %s1894_s27, 4  ;;  %s87_s21 = sshll.u32 %s1895_s6, 4  ;;  %s60_s28 = int_to_ptr.vmem [resolvable:$true] %s59_s28  ;;  %s2048_s21 = int_to_ptr.vmem [resolvable:$true] %s87_s21 }
  0x54   :  { %s1785_s2 = scalar_lea.hbm %s2281_s4, 1024 }
  0x55   :  { %p1786_p7 = scmp.ne.s32.totalorder %s2281_s4, %s1785_s2  ;;  %p1789_p8 = scmp.lt.u32.totalorder %s1785_s2, %s2281_s4 }
  0x57   :  { %p1791_p9 = pnand %p1789_p8, %p1786_p7 }
  0x59   :  { %1794 = shalt.err (!%p1791_p9)
}
  0x5a   :  { %s1795_s1 = scalar_lea.vmem %s60_s28, 1024  ;;  %p1800_p11 = scmp.lt.s32.totalorder %s60_s28, %s60_s28 }
  0x5b   :  { %p1796_p10 = scmp.ne.s32.totalorder %s60_s28, %s1795_s1  ;;  %p1801_p12 = scmp.lt.s32.totalorder %s1795_s1, %s1795_s1 }
  0x5d   :  { %p1802_p13 = por %p1801_p12, %p1800_p11 }
  0x5f   :  { %p1803_p0 = pnand %p1802_p13, %p1796_p10 }
  0x61   :  { %1806 = shalt.err (!%p1803_p0)
}
  0x62   :  { %65 = dma.hbm_to_vmem [thread:$0]  %s2281_s4, 1024, %s60_s28, [#allocation8], %s1887_s16, %s1887_s16, %s1888_s17  }
  0x63   :  { %s1807_s26 = scalar_lea.hbm %s2285_s8, 1024 }
  0x64   :  { %p1808_p1 = scmp.ne.s32.totalorder %s2285_s8, %s1807_s26  ;;  %p1811_p2 = scmp.lt.u32.totalorder %s1807_s26, %s2285_s8 }
  0x66   :  { %p1813_p3 = pnand %p1811_p2, %p1808_p1 }
  0x68   :  { %1816 = shalt.err (!%p1813_p3)
}
  0x69   :  { %s1817_s2 = scalar_lea.vmem %s2048_s21, 1024  ;;  %p1822_p5 = scmp.lt.s32.totalorder %s2048_s21, %s2048_s21 }
  0x6a   :  { %p1818_p4 = scmp.ne.s32.totalorder %s2048_s21, %s1817_s2  ;;  %p1823_p6 = scmp.lt.s32.totalorder %s1817_s2, %s1817_s2 }
  0x6c   :  { %p1824_p7 = por %p1823_p6, %p1822_p5 }
  0x6e   :  { %p1825_p8 = pnand %p1824_p7, %p1818_p4 }
  0x70   :  { %1828 = shalt.err (!%p1825_p8)
}
  0x71   :  { %93 = dma.hbm_to_vmem [thread:$0]  %s2285_s8, 1024, %s2048_s21, [#allocation11], %s1887_s16, %s1887_s16, %s1888_s17  }
  0x72   :  { %s1896_s24 = smov [#allocation15]   ;;  %s1829_s1 = scalar_lea.hbm %s2289_s12, 1024 }
  0x73   :  { %s115_s15 = sshll.u32 %s1896_s24, 4  ;;  %p1830_p9 = scmp.ne.s32.totalorder %s2289_s12, %s1829_s1  ;;  %s116_s15 = int_to_ptr.vmem [resolvable:$true] %s115_s15 }
  0x74   :  { %p1833_p10 = scmp.lt.u32.totalorder %s1829_s1, %s2289_s12 }
  0x76   :  { %p1835_p11 = pnand %p1833_p10, %p1830_p9 }
  0x78   :  { %1838 = shalt.err (!%p1835_p11)
}
  0x79   :  { %s1839_s26 = scalar_lea.vmem %s116_s15, 1024  ;;  %p1844_p13 = scmp.lt.s32.totalorder %s116_s15, %s116_s15 }
  0x7a   :  { %p1840_p12 = scmp.ne.s32.totalorder %s116_s15, %s1839_s26  ;;  %p1845_p0 = scmp.lt.s32.totalorder %s1839_s26, %s1839_s26 }
  0x7c   :  { %p1846_p1 = por %p1845_p0, %p1844_p13 }
  0x7e   :  { %p1847_p2 = pnand %p1846_p1, %p1840_p12 }
  0x80   :  { %1850 = shalt.err (!%p1847_p2)
}
  0x81   :  { %121 = dma.hbm_to_vmem [thread:$0]  %s2289_s12, 1024, %s116_s15, [#allocation14], %s1887_s16, %s1887_s16, %s1888_s17  }
  0x82   :  { %1875 = dma.done.wait [#allocation5], 256  }
  0x83   :  { %1876 = vsyncadd [#allocation5], 4294967040 }
  0x84   :  { %1877 = dma.done.wait [#allocation8], 2048  }
  0x85   :  { %1878 = vsyncadd [#allocation8], 4294965248 }
  0x86   :  { %1879 = dma.done.wait [#allocation11], 2048  }
  0x87   :  { %1880 = vsyncadd [#allocation11], 4294965248 }
  0x88   :  { %1881 = dma.done.wait [#allocation14], 2048  }
  0x89   :  { %1882 = vsyncadd [#allocation14], 4294965248  ;;  %v1897_v0 = vmov 0.0   ;;  %vm1898_vm0 = vmmov 0   ;;  %v1623_v1 = vld [vmem:[#allocation9] sm:$0xff]   ;;  %v1625_v3 = vld [vmem:[#allocation9 + $0x8] sm:$0xff]   ;;  %v147_v40 = vlaneseq }
  0x8a   :  { %1457 = vmatprep.subr.bf16.mxu1 %v1897_v0  ;;  %1437 = vmatprep.subr.bf16.mxu0 %v1897_v0  ;;  %v1624_v2 = vld [vmem:[#allocation7] sm:$0xff]   ;;  %v1626_v4 = vld [vmem:[#allocation7 + $0x8] sm:$0xff]   ;;  %v1627_v5 = vld [vmem:[#allocation9 + $0x10] sm:$0xff]   ;;  %vm601_vm3 = vcmask 64512   ;;  %vm641_vm4 = vcmask 1043456  }
  0x8b   :  { %1473 = vmatprep.mubr.msk.bf16.mxu1 %vm1898_vm0, %v1897_v0  ;;  %1453 = vmatprep.mubr.msk.bf16.mxu0 %vm1898_vm0, %v1897_v0  ;;  %v1628_v6 = vld [vmem:[#allocation7 + $0x10] sm:$0xff]   ;;  %v1629_v7 = vld [vmem:[#allocation9 + $0x18] sm:$0xff]   ;;  %v1631_v9 = vld [vmem:[#allocation9 + $0x20] sm:$0xff]   ;;  %v148_v41 = vand.u32 127, %v147_v40  ;;  %v2147_v43 = vshrl.u32 %v147_v40, 7 }
  0x8c   :  { %1458 = vmatpush3.bf16.msra.mxu1 %v1623_v1  ;;  %1438 = vmatpush3.bf16.msra.mxu0 %v1624_v2  ;;  %v1630_v8 = vld [vmem:[#allocation7 + $0x18] sm:$0xff]   ;;  %v1632_v10 = vld [vmem:[#allocation7 + $0x20] sm:$0xff]   ;;  %v1633_v11 = vld [vmem:[#allocation9 + $0x28] sm:$0xff]  }
  0x8d   :  { %1459 = vmatprep.subr.bf16.mxu1 %v1897_v0  ;;  %1439 = vmatprep.subr.bf16.mxu0 %v1897_v0  ;;  %v1634_v12 = vld [vmem:[#allocation7 + $0x28] sm:$0xff]   ;;  %v1635_v13 = vld [vmem:[#allocation9 + $0x30] sm:$0xff]   ;;  %v1637_v15 = vld [vmem:[#allocation9 + $0x38] sm:$0xff]   ;;  %v515_v44 = vsub.s32 0, %v2147_v43 }
  0x8e   :  { %v1636_v14 = vld [vmem:[#allocation7 + $0x30] sm:$0xff]   ;;  %v167_v17 = vld [vmem:[#allocation4 + $0x8] sm:$0xff]  ;;  %v1639_v62 = vld [vmem:[#allocation10] sm:$0xff]  }
  0x8f   :  { %v166_v16 = vld [vmem:[#allocation4] sm:$0xff]  ;;  %v1638_v18 = vld [vmem:[#allocation7 + $0x38] sm:$0xff]   ;;  %v1640_v63 = vld [vmem:[#allocation10 + $0x8] sm:$0xff]  }
  0x90   :  { %1460 = vmatpush3.bf16.msra.mxu1 %v1625_v3  ;;  %1440 = vmatpush3.bf16.msra.mxu0 %v1626_v4  ;;  %v2120_v19 = vpack.c.bf16 %v167_v17, %v166_v16  ;;  %v1318_v20 = vld [vmem:[%s2282_s5] ss:$0 sm:$0xff]  ;;  %s2145_s5 = sld [smem:[#allocation3 + $0x1]]  ;;  %v1642_v2 = vld [vmem:[#allocation10 + $0x18] sm:$0xff]   ;;  %v1643_v3 = vld [vmem:[#allocation10 + $0x20] sm:$0xff]   ;;  %v1899_v17 = vmov 0  }
  0x91   :  { %1461 = vmatprep.subr.bf16.mxu1 %v1897_v0  ;;  %1441 = vmatprep.subr.bf16.mxu0 %v1897_v0  ;;  %v1309_v21 = vld [vmem:[%s2280_s3] ss:$0 sm:$0xff]  ;;  %s2142_s3 = sld [smem:[#allocation3]]  ;;  %v1644_v4 = vld [vmem:[#allocation10 + $0x28] sm:$0xff]  }
  0x92   :  { %v1641_v1 = vld [vmem:[#allocation10 + $0x10] sm:$0xff]   ;;  %1621 = vset.pattern.permute.xlu0 %v1899_v17  ;;  %1622 = vset.pattern.permute.xlu1 %v1899_v17  ;;  %v1657_v40 = vld [vmem:[#allocation12 + $0x28] sm:$0xff]  }
  0x94   :  { %1462 = vmatpush3.bf16.msra.mxu1 %v1627_v5  ;;  %1442 = vmatpush3.bf16.msra.mxu0 %v1628_v6  ;;  %v1645_v5 = vld [vmem:[#allocation10 + $0x30] sm:$0xff]   ;;  %v1646_v6 = vld [vmem:[#allocation10 + $0x38] sm:$0xff]  }
  0x95   :  { %1463 = vmatprep.subr.bf16.mxu1 %v1897_v0  ;;  %1443 = vmatprep.subr.bf16.mxu0 %v1897_v0 }
  0x96   :  { %v160_v46 = vstv %s2145_s5 }
  0x97   :  { %v152_v42 = vstv %s2142_s3  ;;  %vm161_vm2 = vcmp.ge.s32.totalorder %v148_v41, %v160_v46  ;;  %vm163_vm6 = vcmp.lt.s32.totalorder %v2147_v43, %v160_v46 }
  0x98   :  { %1464 = vmatpush3.bf16.msra.mxu1 %v1629_v7  ;;  %1444 = vmatpush3.bf16.msra.mxu0 %v1630_v8  ;;  %vm153_vm1 = vcmp.ge.s32.totalorder %v148_v41, %v152_v42  ;;  %v162_v52 = vsel %vm161_vm2, -1e+12, %v1897_v0  ;;  %vm155_vm5 = vcmp.lt.s32.totalorder %v2147_v43, %v152_v42 }
  0x99   :  { %1465 = vmatprep.subr.bf16.mxu1 %v1897_v0  ;;  %1445 = vmatprep.subr.bf16.mxu0 %v1897_v0  ;;  %v154_v45 = vsel %vm153_vm1, -1e+12, %v1897_v0  ;;  %v2161_v55 = vrot.slane %v162_v52, %v515_v44  ;;  %v1652_v52 = vld [vmem:[#allocation13 + $0x10] sm:$0xff]  }
  0x9a   :  { %v2154_v47 = vrot.slane %v154_v45, %v515_v44 }
  0x9c   :  { %1466 = vmatpush3.bf16.msra.mxu1 %v1631_v9  ;;  %1446 = vmatpush3.bf16.msra.mxu0 %v1632_v10 }
  0x9d   :  { %1467 = vmatprep.subr.bf16.mxu1 %v1897_v0  ;;  %1447 = vmatprep.subr.bf16.mxu0 %v1897_v0 }
  0xa0   :  { %1468 = vmatpush3.bf16.msra.mxu1 %v1633_v11  ;;  %1448 = vmatpush3.bf16.msra.mxu0 %v1634_v12 }
  0xa1   :  { %1469 = vmatprep.subr.bf16.mxu1 %v1897_v0  ;;  %1449 = vmatprep.subr.bf16.mxu0 %v1897_v0 }
  0xa4   :  { %1470 = vmatpush3.bf16.msra.mxu1 %v1635_v13  ;;  %1450 = vmatpush3.bf16.msra.mxu0 %v1636_v14 }
  0xa5   :  { %1471 = vmatprep.subr.bf16.mxu1 %v1897_v0  ;;  %1451 = vmatprep.subr.bf16.mxu0 %v1897_v0 }
  0xa8   :  { %1472 = vmatpush3.bf16.msra.mxu1 %v1637_v15  ;;  %1452 = vmatpush3.bf16.msra.mxu0 %v1638_v18  ;;  %v1327_v18 = vld [vmem:[%s2284_s7] ss:$0 sm:$0xff] }
  0xa9   :  { %1497 = vmatprep.subr.bf16.mxu1 %v1897_v0  ;;  %1477 = vmatprep.subr.bf16.mxu0 %v1897_v0 }
  0xab   :  { %1474 = vmatmul.mubr.bf16.vlgmr.msra.gmra.mrb[0].mxu1 %v2120_v19  ;;  %1454 = vmatmul.mubr.bf16.vlgmr.msra.gmra.mrb[0].mxu0 %v2120_v19 }
  0xac   :  { %1499 = vmatprep.mubr.msk.bf16.mxu1 %vm1898_vm0, %v1897_v0  ;;  %1493 = vmatprep.mubr.msk.bf16.mxu0 %vm1898_vm0, %v1897_v0 }
  0xad   :  { %1478 = vmatpush3.bf16.msra.mxu0 %v1639_v62 }
  0xae   :  { %1479 = vmatprep.subr.bf16.mxu0 %v1897_v0 }
  0xb1   :  { %1480 = vmatpush3.bf16.msra.mxu0 %v1640_v63 }
  0xb2   :  { %1481 = vmatprep.subr.bf16.mxu0 %v1897_v0 }
  0xb5   :  { %1482 = vmatpush3.bf16.msra.mxu0 %v1641_v1 }
  0xb6   :  { %1483 = vmatprep.subr.bf16.mxu0 %v1897_v0 }
  0xb9   :  { %1484 = vmatpush3.bf16.msra.mxu0 %v1642_v2 }
  0xba   :  { %1485 = vmatprep.subr.bf16.mxu0 %v1897_v0 }
  0xbd   :  { %1486 = vmatpush3.bf16.msra.mxu0 %v1643_v3  ;;  %v1663_v3 = vld [vmem:[#allocation15] sm:$0xff]  }
  0xbe   :  { %1487 = vmatprep.subr.bf16.mxu0 %v1897_v0 }
  0xc1   :  { %1488 = vmatpush3.bf16.msra.mxu0 %v1644_v4 }
  0xc2   :  { %1489 = vmatprep.subr.bf16.mxu0 %v1897_v0 }
  0xc5   :  { %1490 = vmatpush3.bf16.msra.mxu0 %v1645_v5 }
  0xc6   :  { %1491 = vmatprep.subr.bf16.mxu0 %v1897_v0 }
  0xc9   :  { %1492 = vmatpush3.bf16.msra.mxu0 %v1646_v6 }
  0xca   :  { %1521 = vmatprep.subr.bf16.mxu0 %v1897_v0 }
  0xcc   :  { %1494 = vmatmul.mubr.bf16.vlgmr.msra.gmra.mrb[4].mxu0 %v2120_v19 }
  0xcd   :  { %1537 = vmatprep.mubr.msk.bf16.mxu0 %vm1898_vm0, %v1897_v0 }
 0x17e   :  { %v386_v22 = vpop.f32.mrb[0].mxu1  ;;  %v274_v25 = vpop.f32.mrb[0].mxu0 }
 0x17f   :  { %v387_v23 = vadd.f32 %v1318_v20, %v386_v22  ;;  %v1475_v24 = vpop.f32.mrb[1].mxu1  ;;  %v275_v26 = vadd.f32 %v1309_v21, %v274_v25  ;;  %v1455_v28 = vpop.f32.mrb[1].mxu0 }
 0x180   :  { %v389_v27 = vpop.f32.mrb[2].mxu1  ;;  %v277_v31 = vpop.f32.mrb[2].mxu0 }
 0x181   :  { %v509_v29 = vpack.c.bf16 %v387_v23, %v387_v23  ;;  %v1476_v30 = vpop.f32.mrb[3].mxu1  ;;  %v505_v32 = vmul.f32 0.17677669, %v275_v26  ;;  %v1456_v33 = vpop.f32.mrb[3].mxu0  ;;  %v390_v34 = vadd.f32 %v1318_v20, %v389_v27  ;;  %v278_v36 = vadd.f32 %v1309_v21, %v277_v31 }
 0x183   :  { %1498 = vmatpush3.bf16.xpose.msra.mxu1 %v509_v29  ;;  %v507_v35 = vpack.c.bf16 %v505_v32, %v505_v32  ;;  %v510_v37 = vpack.c.bf16 %v390_v34, %v390_v34  ;;  %v506_v38 = vmul.f32 0.17677669, %v278_v36  ;;  %v2187_v29 = vsel %vm155_vm5, 1.0, %v1897_v0  ;;  %v1649_v36 = vld [vmem:[#allocation12 + $0x8] sm:$0xff]  }
 0x184   :  { %1503 = vmatprep.subr.bf16.mxu1 %v1897_v0  ;;  %v2194_v32 = vsel %vm163_vm6, 1.0, %v1897_v0 }
 0x185   :  { %v508_v39 = vpack.c.bf16 %v506_v38, %v506_v38  ;;  %v1653_v38 = vld [vmem:[#allocation12 + $0x18] sm:$0xff]  }
 0x18a   :  { %1500 = vmatmul.mubr.bf16.vlgmr.msra.gmra.mrb[4].mxu1 %v507_v35  ;;  %v1647_v35 = vld [vmem:[#allocation12] sm:$0xff]  }
 0x18b   :  { %1504 = vmatpush3.bf16.xpose.msra.mxu1 %v510_v37  ;;  %1505 = vmatprep.mubr.msk.bf16.mxu1 %vm1898_vm0, %v1897_v0  ;;  %v1651_v37 = vld [vmem:[#allocation12 + $0x10] sm:$0xff]  }
 0x18c   :  { %1509 = vmatprep.subr.bf16.mxu1 %v1897_v0  ;;  %1522 = vmatpush3.bf16.msra.mxu0 %v1647_v35 }
 0x18d   :  { %1523 = vmatprep.subr.bf16.mxu0 %v1897_v0 }
 0x190   :  { %1524 = vmatpush3.bf16.msra.mxu0 %v1649_v36 }
 0x191   :  { %1525 = vmatprep.subr.bf16.mxu0 %v1897_v0 }
 0x192   :  { %1506 = vmatmul.mubr.bf16.vlgmr.msra.gmra.mrb[8].mxu1 %v508_v39  ;;  %v1655_v39 = vld [vmem:[#allocation12 + $0x20] sm:$0xff]  }
 0x193   :  { %1511 = vmatprep.mubr.msk.bf16.mxu1 %vm1898_vm0, %v1897_v0 }
 0x194   :  { %1526 = vmatpush3.bf16.msra.mxu0 %v1651_v37  ;;  %v1356_v37 = vld [vmem:[%s2290_s13] ss:$0 sm:$0xff]  ;;  %s1900_s13 = smov [#allocation16]  }
 0x195   :  { %1527 = vmatprep.subr.bf16.mxu0 %v1897_v0  ;;  %s1291_s28 = sshll.u32 %s1900_s13, 4  ;;  %s1292_s28 = int_to_ptr.vmem [resolvable:$true] %s1291_s28 }
 0x196   :  { %s1851_s24 = scalar_lea.vmem %s1292_s28, 256  ;;  %p1856_p4 = scmp.lt.s32.totalorder %s1292_s28, %s1292_s28 }
 0x197   :  { %p1852_p3 = scmp.ne.s32.totalorder %s1292_s28, %s1851_s24  ;;  %p1857_p5 = scmp.lt.s32.totalorder %s1851_s24, %s1851_s24 }
 0x198   :  { %1528 = vmatpush3.bf16.msra.mxu0 %v1653_v38 }
 0x199   :  { %1529 = vmatprep.subr.bf16.mxu0 %v1897_v0  ;;  %p1858_p6 = por %p1857_p5, %p1856_p4 }
 0x19b   :  { %p1859_p7 = pnand %p1858_p6, %p1852_p3 }
 0x19c   :  { %1530 = vmatpush3.bf16.msra.mxu0 %v1655_v39 }
 0x19d   :  { %1531 = vmatprep.subr.bf16.mxu0 %v1897_v0 }
 0x19f   :  { %v498_v19 = vpop.f32.mrb[4].mxu0 }
 0x1a0   :  { %v499_v20 = vadd.f32 %v1327_v18, %v498_v19  ;;  %v1495_v21 = vpop.f32.mrb[5].mxu0  ;;  %1532 = vmatpush3.bf16.msra.mxu0 %v1657_v40 }
 0x1a1   :  { %v501_v22 = vpop.f32.mrb[6].mxu0  ;;  %1533 = vmatprep.subr.bf16.mxu0 %v1897_v0 }
 0x1a2   :  { %v511_v23 = vpack.c.bf16 %v499_v20, %v499_v20  ;;  %v502_v24 = vadd.f32 %v1327_v18, %v501_v22  ;;  %v1496_v25 = vpop.f32.mrb[7].mxu0 }
 0x1a4   :  { %v643_v26 = vsel %vm641_vm4, %v511_v23, 0  ;;  %v512_v42 = vpack.c.bf16 %v502_v24, %v502_v24 }
 0x1a5   :  { %1510 = vmatpush3.bf16.msra.mxu1 %v643_v26 }
 0x1a6   :  { %1515 = vmatprep.subr.bf16.mxu1 %v1897_v0  ;;  %v689_v45 = vsel %vm641_vm4, %v512_v42, 0 }
 0x25d   :  { %v555_v48 = vpop.f32.mrb[4].mxu1 }
 0x25e   :  { %v556_v49 = vadd.f32 %v555_v48, %v2154_v47  ;;  %v1501_v50 = vpop.f32.mrb[5].mxu1 }
 0x25f   :  { %v558_v51 = vpop.f32.mrb[6].mxu1 }
 0x260   :  { %v1502_v53 = vpop.f32.mrb[7].mxu1  ;;  %v602_v54 = vsel %vm601_vm3, %v556_v49, -inf  ;;  %v1650_v51 = vld [vmem:[#allocation13 + $0x8] sm:$0xff]  }
 0x261   :  { %603 = vmax.xlane.f32.xlu0 %v602_v54  ;;  %v1654_v53 = vld [vmem:[#allocation13 + $0x18] sm:$0xff]   ;;  %v1656_v54 = vld [vmem:[#allocation13 + $0x20] sm:$0xff]  }
 0x265   :  { %v595_v56 = vpop.f32.mrb[8].mxu1 }
 0x266   :  { %v596_v57 = vadd.f32 %v595_v56, %v2161_v55  ;;  %v1507_v58 = vpop.f32.mrb[9].mxu1  ;;  %v1658_v56 = vld [vmem:[#allocation13 + $0x28] sm:$0xff]  }
 0x267   :  { %v598_v59 = vpop.f32.mrb[10].mxu1  ;;  %v1660_v58 = vld [vmem:[#allocation13 + $0x30] sm:$0xff]  }
 0x268   :  { %v1508_v60 = vpop.f32.mrb[11].mxu1  ;;  %v605_v61 = vsel %vm601_vm3, %v596_v57, -inf  ;;  %v1661_v59 = vld [vmem:[#allocation12 + $0x38] sm:$0xff]  }
 0x269   :  { %606 = vmax.xlane.f32.xlu0 %v605_v61  ;;  %v1662_v60 = vld [vmem:[#allocation13 + $0x38] sm:$0xff]  }
 0x2ee   :  { %v604_v7 = vpop.xlane.xlu0 %603 }
 0x2ef   :  { %v608_v8 = vsub.f32 %v556_v49, %v604_v7  ;;  %v1648_v49 = vld [vmem:[#allocation13] sm:$0xff]  }
 0x2f1   :  { %v610_v9 = vmul.f32 1.442695, %v608_v8  ;;  %v1664_v8 = vld [vmem:[#allocation15 + $0x8] sm:$0xff]  }
 0x2f3   :  { %1671 = vpow2.f32 %v610_v9  ;;  %v1665_v9 = vld [vmem:[#allocation15 + $0x10] sm:$0xff]  }
 0x2f6   :  { %v607_v10 = vpop.xlane.xlu0 %606 }
 0x2f7   :  { %v609_v11 = vsub.f32 %v596_v57, %v607_v10  ;;  %v1659_v57 = vld [vmem:[#allocation12 + $0x30] sm:$0xff]   ;;  %v1666_v10 = vld [vmem:[#allocation15 + $0x18] sm:$0xff]  }
 0x2f8   :  { %1534 = vmatpush3.bf16.msra.mxu0 %v1659_v57 }
 0x2f9   :  { %v612_v12 = vmul.f32 1.442695, %v609_v11  ;;  %1535 = vmatprep.subr.bf16.mxu0 %v1897_v0  ;;  %v1667_v11 = vld [vmem:[#allocation15 + $0x20] sm:$0xff]  }
 0x2fb   :  { %1673 = vpow2.f32 %v612_v12  ;;  %v1668_v12 = vld [vmem:[#allocation15 + $0x28] sm:$0xff]  }
 0x2fc   :  { %1536 = vmatpush3.bf16.msra.mxu0 %v1661_v59 }
 0x2fd   :  { %v1672_v13 = vpop.eup %1671  ;;  %1561 = vmatprep.subr.bf16.mxu0 %v1897_v0 }
 0x2fe   :  { %v614_v14 = vsel %vm601_vm3, %v1672_v13, 0.0 }
 0x2ff   :  { %615 = vadd.xlane.f32.xlu1 %v614_v14  ;;  %v1670_v14 = vld [vmem:[#allocation15 + $0x38] sm:$0xff]  }
 0x305   :  { %v1674_v15 = vpop.eup %1673 }
 0x306   :  { %v617_v16 = vsel %vm601_vm3, %v1674_v15, 0.0 }
 0x307   :  { %618 = vadd.xlane.f32.xlu1 %v617_v16  ;;  %v1338_v16 = vld [vmem:[%s2286_s9] ss:$0 sm:$0xff] }
 0x38c   :  { %v616_v27 = vpop.xlane.xlu1 %615 }
 0x38d   :  { %1675 = vrcp.f32 %v616_v27 }
 0x394   :  { %v619_v28 = vpop.xlane.xlu1 %618 }
 0x395   :  { %1677 = vrcp.f32 %v619_v28 }
 0x397   :  { %v1676_v30 = vpop.eup %1675 }
 0x398   :  { %v622_v31 = vmul.f32 %v1676_v30, %v2187_v29 }
 0x39a   :  { %626 = vperm.xlu0 %1621, %v622_v31  }
 0x39f   :  { %v1678_v33 = vpop.eup %1677 }
 0x3a0   :  { %v623_v34 = vmul.f32 %v1678_v33, %v2194_v32 }
 0x3a2   :  { %631 = vperm.xlu1 %1622, %v623_v34  }
 0x419   :  { %v627_v41 = vpop.permute.xlu0 %626 }
 0x41a   :  { %v634_v43 = vmul.f32 %v1672_v13, %v627_v41  ;;  %v1669_v13 = vld [vmem:[#allocation15 + $0x30] sm:$0xff]  }
 0x41c   :  { %v636_v44 = vpack.c.bf16 %v634_v43, %v634_v43 }
 0x41e   :  { %1512 = vmatmul.mubr.msk.bf16.vlgmr.msra.gmra.mrb[12].mxu1 %vm601_vm3, %v636_v44 }
 0x41f   :  { %1516 = vmatpush3.bf16.msra.mxu1 %v689_v45  ;;  %1517 = vmatprep.mubr.msk.bf16.mxu1 %vm1898_vm0, %v1897_v0 }
 0x420   :  { %1541 = vmatprep.subr.bf16.mxu1 %v1897_v0 }
 0x421   :  { %v632_v46 = vpop.permute.xlu1 %631 }
 0x422   :  { %v635_v48 = vmul.f32 %v1674_v15, %v632_v46  ;;  %v1347_v15 = vld [vmem:[%s2288_s11] ss:$0 sm:$0xff] }
 0x424   :  { %v637_v50 = vpack.c.bf16 %v635_v48, %v635_v48 }
 0x426   :  { %1518 = vmatmul.mubr.msk.bf16.vlgmr.msra.gmra.mrb[16].mxu1 %vm601_vm3, %v637_v50 }
 0x427   :  { %1542 = vmatpush3.bf16.msra.mxu1 %v1648_v49  ;;  %1557 = vmatprep.mubr.msk.bf16.mxu1 %vm1898_vm0, %v1897_v0 }
 0x428   :  { %1543 = vmatprep.subr.bf16.mxu1 %v1897_v0 }
 0x42b   :  { %1544 = vmatpush3.bf16.msra.mxu1 %v1650_v51 }
 0x42c   :  { %1545 = vmatprep.subr.bf16.mxu1 %v1897_v0 }
 0x42f   :  { %1546 = vmatpush3.bf16.msra.mxu1 %v1652_v52 }
 0x430   :  { %1547 = vmatprep.subr.bf16.mxu1 %v1897_v0 }
 0x433   :  { %1548 = vmatpush3.bf16.msra.mxu1 %v1654_v53 }
 0x434   :  { %1549 = vmatprep.subr.bf16.mxu1 %v1897_v0 }
 0x437   :  { %1550 = vmatpush3.bf16.msra.mxu1 %v1656_v54 }
 0x438   :  { %1551 = vmatprep.subr.bf16.mxu1 %v1897_v0 }
 0x43b   :  { %1552 = vmatpush3.bf16.msra.mxu1 %v1658_v56 }
 0x43c   :  { %1553 = vmatprep.subr.bf16.mxu1 %v1897_v0 }
 0x43f   :  { %1554 = vmatpush3.bf16.msra.mxu1 %v1660_v58 }
 0x440   :  { %1555 = vmatprep.subr.bf16.mxu1 %v1897_v0 }
 0x443   :  { %1556 = vmatpush3.bf16.msra.mxu1 %v1662_v60 }
 0x444   :  { %1581 = vmatprep.subr.bf16.mxu1 %v1897_v0 }
 0x4f1   :  { %v679_v61 = vpop.f32.mrb[12].mxu1 }
 0x4f2   :  { %v1513_v62 = vpop.f32.mrb[13].mxu1 }
 0x4f3   :  { %v682_v63 = vpop.f32.mrb[14].mxu1 }
 0x4f4   :  { %v1514_v1 = vpop.f32.mrb[15].mxu1 }
 0x4f9   :  { %v725_v2 = vpop.f32.mrb[16].mxu1 }
 0x4fa   :  { %v731_v4 = vpack.c.bf16 %v725_v2, %v679_v61  ;;  %v1519_v5 = vpop.f32.mrb[17].mxu1 }
 0x4fb   :  { %v728_v6 = vpop.f32.mrb[18].mxu1 }
 0x4fc   :  { %v1520_v7 = vpop.f32.mrb[19].mxu1  ;;  %1538 = vmatmul.mubr.bf16.vlgmr.msra.gmra.mrb[8].mxu0 %v731_v4  ;;  %1558 = vmatmul.mubr.bf16.vlgmr.msra.gmra.mrb[20].mxu1 %v731_v4 }
 0x4fd   :  { %1562 = vmatpush3.bf16.msra.mxu0 %v1663_v3  ;;  %1577 = vmatprep.mubr.msk.bf16.mxu0 %vm1898_vm0, %v1897_v0 }
 0x4fe   :  { %1563 = vmatprep.subr.bf16.mxu0 %v1897_v0  ;;  %1583 = vmatprep.mubr.msk.bf16.mxu1 %vm1898_vm0, %v1897_v0 }
 0x501   :  { %1564 = vmatpush3.bf16.msra.mxu0 %v1664_v8 }
 0x502   :  { %1565 = vmatprep.subr.bf16.mxu0 %v1897_v0 }
 0x505   :  { %1566 = vmatpush3.bf16.msra.mxu0 %v1665_v9 }
 0x506   :  { %1567 = vmatprep.subr.bf16.mxu0 %v1897_v0 }
 0x509   :  { %1568 = vmatpush3.bf16.msra.mxu0 %v1666_v10 }
 0x50a   :  { %1569 = vmatprep.subr.bf16.mxu0 %v1897_v0 }
 0x50d   :  { %1570 = vmatpush3.bf16.msra.mxu0 %v1667_v11 }
 0x50e   :  { %1571 = vmatprep.subr.bf16.mxu0 %v1897_v0 }
 0x511   :  { %1572 = vmatpush3.bf16.msra.mxu0 %v1668_v12 }
 0x512   :  { %1573 = vmatprep.subr.bf16.mxu0 %v1897_v0 }
 0x515   :  { %1574 = vmatpush3.bf16.msra.mxu0 %v1669_v13 }
 0x516   :  { %1575 = vmatprep.subr.bf16.mxu0 %v1897_v0 }
 0x519   :  { %1576 = vmatpush3.bf16.msra.mxu0 %v1670_v14 }
 0x51c   :  { %1578 = vmatmul.mubr.bf16.vlgmr.msra.gmra.mrb[12].mxu0 %v731_v4 }
 0x5cf   :  { %v837_v17 = vpop.f32.mrb[8].mxu0  ;;  %v949_v18 = vpop.f32.mrb[20].mxu1 }
 0x5d0   :  { %v950_v19 = vadd.f32 %v1347_v15, %v949_v18  ;;  %v1539_v20 = vpop.f32.mrb[9].mxu0  ;;  %v1559_v21 = vpop.f32.mrb[21].mxu1  ;;  %v838_v22 = vadd.f32 %v1338_v16, %v837_v17 }
 0x5d1   :  { %v840_v23 = vpop.f32.mrb[10].mxu0  ;;  %v952_v24 = vpop.f32.mrb[22].mxu1 }
 0x5d2   :  { %v1072_v25 = vpack.c.bf16 %v950_v19, %v950_v19  ;;  %v1540_v26 = vpop.f32.mrb[11].mxu0  ;;  %v1560_v27 = vpop.f32.mrb[23].mxu1  ;;  %v1068_v28 = vmul.f32 0.17677669, %v838_v22  ;;  %v953_v30 = vadd.f32 %v1347_v15, %v952_v24  ;;  %v841_v33 = vadd.f32 %v1338_v16, %v840_v23 }
 0x5d4   :  { %1582 = vmatpush3.bf16.xpose.msra.mxu1 %v1072_v25  ;;  %v1070_v31 = vpack.c.bf16 %v1068_v28, %v1068_v28  ;;  %v1073_v34 = vpack.c.bf16 %v953_v30, %v953_v30  ;;  %v1069_v35 = vmul.f32 0.17677669, %v841_v33 }
 0x5d5   :  { %1587 = vmatprep.subr.bf16.mxu1 %v1897_v0 }
 0x5d6   :  { %v1071_v36 = vpack.c.bf16 %v1069_v35, %v1069_v35 }
 0x5db   :  { %1584 = vmatmul.mubr.bf16.vlgmr.msra.gmra.mrb[24].mxu1 %v1070_v31 }
 0x5dc   :  { %1588 = vmatpush3.bf16.xpose.msra.mxu1 %v1073_v34  ;;  %1589 = vmatprep.mubr.msk.bf16.mxu1 %vm1898_vm0, %v1897_v0 }
 0x5dd   :  { %1593 = vmatprep.subr.bf16.mxu1 %v1897_v0 }
 0x5e3   :  { %1590 = vmatmul.mubr.bf16.vlgmr.msra.gmra.mrb[28].mxu1 %v1071_v36 }
 0x5e4   :  { %1595 = vmatprep.mubr.msk.bf16.mxu1 %vm1898_vm0, %v1897_v0 }
 0x5ef   :  { %v1061_v38 = vpop.f32.mrb[12].mxu0 }
 0x5f0   :  { %v1062_v39 = vadd.f32 %v1356_v37, %v1061_v38  ;;  %v1579_v40 = vpop.f32.mrb[13].mxu0 }
 0x5f1   :  { %v1064_v41 = vpop.f32.mrb[14].mxu0 }
 0x5f2   :  { %v1074_v42 = vpack.c.bf16 %v1062_v39, %v1062_v39  ;;  %v1065_v43 = vadd.f32 %v1356_v37, %v1064_v41  ;;  %v1580_v44 = vpop.f32.mrb[15].mxu0 }
 0x5f4   :  { %v1196_v45 = vsel %vm641_vm4, %v1074_v42, 0  ;;  %v1075_v12 = vpack.c.bf16 %v1065_v43, %v1065_v43 }
 0x5f5   :  { %1594 = vmatpush3.bf16.msra.mxu1 %v1196_v45 }
 0x5f6   :  { %1599 = vmatprep.subr.bf16.mxu1 %v1897_v0  ;;  %v1242_v15 = vsel %vm641_vm4, %v1075_v12, 0 }
 0x6ae   :  { %v1110_v46 = vpop.f32.mrb[24].mxu1 }
 0x6af   :  { %v1111_v48 = vadd.f32 %v1110_v46, %v2154_v47  ;;  %v1585_v49 = vpop.f32.mrb[25].mxu1 }
 0x6b0   :  { %v1113_v50 = vpop.f32.mrb[26].mxu1 }
 0x6b1   :  { %v1586_v51 = vpop.f32.mrb[27].mxu1  ;;  %v1156_v52 = vsel %vm601_vm3, %v1111_v48, -inf }
 0x6b2   :  { %1157 = vmax.xlane.f32.xlu1 %v1156_v52 }
 0x6b6   :  { %v1150_v53 = vpop.f32.mrb[28].mxu1 }
 0x6b7   :  { %v1151_v54 = vadd.f32 %v1150_v53, %v2161_v55  ;;  %v1591_v56 = vpop.f32.mrb[29].mxu1 }
 0x6b8   :  { %v1153_v57 = vpop.f32.mrb[30].mxu1 }
 0x6b9   :  { %v1592_v58 = vpop.f32.mrb[31].mxu1  ;;  %v1159_v59 = vsel %vm601_vm3, %v1151_v54, -inf }
 0x6ba   :  { %1160 = vmax.xlane.f32.xlu0 %v1159_v59 }
 0x73f   :  { %v1158_v60 = vpop.xlane.xlu1 %1157 }
 0x740   :  { %v1162_v61 = vsub.f32 %v1111_v48, %v1158_v60 }
 0x742   :  { %v1164_v62 = vmul.f32 1.442695, %v1162_v61 }
 0x744   :  { %1679 = vpow2.f32 %v1164_v62 }
 0x747   :  { %v1161_v47 = vpop.xlane.xlu0 %1160 }
 0x748   :  { %v1163_v63 = vsub.f32 %v1151_v54, %v1161_v47 }
 0x74a   :  { %v1166_v1 = vmul.f32 1.442695, %v1163_v63 }
 0x74c   :  { %1681 = vpow2.f32 %v1166_v1 }
 0x74e   :  { %v1680_v2 = vpop.eup %1679 }
 0x74f   :  { %v1168_v3 = vsel %vm601_vm3, %v1680_v2, 0.0 }
 0x750   :  { %1169 = vadd.xlane.f32.xlu1 %v1168_v3 }
 0x756   :  { %v1682_v4 = vpop.eup %1681 }
 0x757   :  { %v1171_v55 = vsel %vm601_vm3, %v1682_v4, 0.0 }
 0x758   :  { %1172 = vadd.xlane.f32.xlu1 %v1171_v55 }
 0x7dd   :  { %v1170_v5 = vpop.xlane.xlu1 %1169 }
 0x7de   :  { %1683 = vrcp.f32 %v1170_v5 }
 0x7e5   :  { %v1173_v6 = vpop.xlane.xlu1 %1172 }
 0x7e6   :  { %1685 = vrcp.f32 %v1173_v6 }
 0x7e8   :  { %v1684_v7 = vpop.eup %1683 }
 0x7e9   :  { %v1176_v8 = vmul.f32 %v1684_v7, %v2187_v29 }
 0x7eb   :  { %1180 = vperm.xlu1 %1622, %v1176_v8  }
 0x7f0   :  { %v1686_v9 = vpop.eup %1685 }
 0x7f1   :  { %v1177_v10 = vmul.f32 %v1686_v9, %v2194_v32 }
 0x7f3   :  { %1185 = vperm.xlu0 %1621, %v1177_v10  }
 0x86a   :  { %v1181_v11 = vpop.permute.xlu1 %1180 }
 0x86b   :  { %v1188_v13 = vmul.f32 %v1680_v2, %v1181_v11 }
 0x86d   :  { %v1190_v14 = vpack.c.bf16 %v1188_v13, %v1188_v13 }
 0x86f   :  { %1596 = vmatmul.mubr.msk.bf16.vlgmr.msra.gmra.mrb[32].mxu1 %vm601_vm3, %v1190_v14 }
 0x870   :  { %1600 = vmatpush3.bf16.msra.mxu1 %v1242_v15  ;;  %1601 = vmatprep.mubr.msk.bf16.mxu1 %vm1898_vm0, %v1897_v0 }
 0x872   :  { %v1186_v16 = vpop.permute.xlu0 %1185 }
 0x873   :  { %v1189_v17 = vmul.f32 %v1682_v4, %v1186_v16 }
 0x875   :  { %v1191_v29 = vpack.c.bf16 %v1189_v17, %v1189_v17 }
 0x877   :  { %1602 = vmatmul.mubr.msk.bf16.vlgmr.msra.gmra.mrb[36].mxu1 %vm601_vm3, %v1191_v29 }
 0x942   :  { %v1232_v18 = vpop.f32.mrb[32].mxu1 }
 0x943   :  { %1284 = vst [vmem:[#allocation16] sm:$0xff] %v1232_v18  ;;  %v1597_v32 = vpop.f32.mrb[33].mxu1 }
 0x944   :  { %v1235_v19 = vpop.f32.mrb[34].mxu1 }
 0x945   :  { %v1598_v20 = vpop.f32.mrb[35].mxu1 }
 0x94a   :  { %v1278_v21 = vpop.f32.mrb[36].mxu1 }
 0x94b   :  { %1285 = vst [vmem:[#allocation16 + $0x8] sm:$0xff] %v1278_v21  ;;  %v1603_v22 = vpop.f32.mrb[37].mxu1 }
 0x94c   :  { %v1281_v23 = vpop.f32.mrb[38].mxu1 }
 0x94d   :  { %1862 = shalt.err (!%p1859_p7)
}
 0x94e   :  { %s1863_s19 = scalar_lea.hbm %s2291_s14, 256 }
 0x94f   :  { %p1864_p8 = scmp.ne.s32.totalorder %s2291_s14, %s1863_s19  ;;  %p1867_p9 = scmp.lt.u32.totalorder %s1863_s19, %s2291_s14 }
 0x951   :  { %p1869_p10 = pnand %p1867_p9, %p1864_p8 }
 0x953   :  { %1872 = shalt.err (!%p1869_p10)
}
 0x954   :  { %1297 = dma.vmem_to_hbm [thread:$0]  %s1292_s28, 256, %s2291_s14, [#allocation6], %s1892_s10, %s1892_s10, %s1893_s23   ;;  %v1604_v0 = vpop.f32.mrb[39].mxu1 }
 0x955   :  { %1883 = dma.done.wait [#allocation6], 256  }
 0x956   :  { %1884 = vsyncadd [#allocation6], 4294967040 }
 0x957   :  { %1301 = vsyncpa [#allocation5], 1 }
 0x958   :  { %1302 = vsyncpa [#allocation8], 1 }
 0x959   :  { %1303 = vsyncpa [#allocation11], 1 }
 0x95a   :  { %1304 = vsyncpa [#allocation14], 1 }
 0x95b   :  { %1305 = vsyncpa [#allocation6], 1 }

</bundles_post_ra>
